<compile_context>
chip_gen: v6e
topology: v6e:2x2x1
jax: 0.10.0
libtpu: 0.0.40
codegen_flags: <defaults>
</compile_context>

<pallas_src>
import functools

import jax
import jax.numpy as jnp
from jax.experimental import pallas as pl
from jax.experimental.pallas import tpu as pltpu

NEG_SLOPE = 0.01      # F.leaky_relu default negative_slope
_BIG_NEG = -1e9       # bias padding so softmax ignores padded lanes
_POOL_NEG = -1e30     # additive mask for invalid conv positions before max-pool


def _round_up(x, m):
    return (x + m - 1) // m * m


def _leaky(x, slope=NEG_SLOPE):
    return jnp.where(x > 0, x, slope * x)


def _softmax(x):
    m = jnp.max(x, axis=-1, keepdims=True)
    e = jnp.exp(x - m)
    return e / jnp.sum(e, axis=-1, keepdims=True)   # exact divide (tiny tensor)


def _cnn_fusion_kernel(C, EV, H, C_PAD,
                       # blocked inputs (bf16)
                       emb_ref, img_ref,
                       # resident pool mask (f32)
                       poolmask_ref,
                       # resident weights (bf16) / biases (f32), lane-padded
                       convw_ref, convb_ref,
                       fc1w_ref, fc1b_ref,
                       imgw_ref, imgb_ref,
                       head1w_ref, head1b_ref,
                       domw2_ref, domb2_ref,
                       # single packed, lane-dense output
                       out_ref):
    TB, S_ext, E = emb_ref.shape
    S_out, F_PAD = poolmask_ref.shape
    KMAX = S_ext - S_out + 1
    OUT_PAD = out_ref.shape[1]

    # --- text branch: emb already masked & bf16; stack KMAX shifted views ---
    x = emb_ref[...]                                             # (TB, S_ext, E) bf16
    x_stack = jnp.concatenate(
        [x[:, k:k + S_out, :] for k in range(KMAX)], axis=-1)    # (TB, S_out, KMAX*E)

    # One MXU contraction covers all conv windows at once.
    conv = jax.lax.dot_general(
        x_stack.reshape(TB * S_out, KMAX * E),
        convw_ref[...],
        dimension_numbers=(((1,), (0,)), ((), ())),
        preferred_element_type=jnp.float32)                      # (TB*S_out, F_PAD)
    conv = conv.reshape(TB, S_out, F_PAD)

    # Hoisted bias/leaky past the max-pool (valid: leaky monotone, bias constant
    # along the pooled axis); one additive -1e30 mask handles per-window valid
    # lengths and the padded conv positions in a single VPU pass.
    pooled = jnp.max(conv + poolmask_ref[...][None, :, :], axis=1)   # (TB, F_PAD)
    pooled = _leaky(pooled + convb_ref[...])                         # F.leaky_relu(fused conv)

    text_h = _leaky(
        jnp.dot(pooled.astype(jnp.bfloat16), fc1w_ref[...],
                preferred_element_type=jnp.float32) + fc1b_ref[...])   # (TB, H_PAD)

    # --- image branch: leaky_relu(image_fc1(vgg(image))) ---
    img_h = _leaky(
        jnp.dot(img_ref[...], imgw_ref[...],
                preferred_element_type=jnp.float32) + imgb_ref[...])   # (TB, H_PAD)

    # --- fused heads: one 256-deep x 256-wide MXU contraction covers both the
    #     class head (c_fc1) and the domain first layer (d_fc1). grad_reverse is
    #     identity in the forward pass. ---
    ti = jnp.concatenate(
        [text_h.astype(jnp.bfloat16), img_h.astype(jnp.bfloat16)], axis=-1)
    h1 = jnp.dot(ti, head1w_ref[...],
                 preferred_element_type=jnp.float32) + head1b_ref[...]
    cls_probs = _softmax(h1[:, :C_PAD])          # padded lanes carry -1e9 bias -> prob 0
    d = h1[:, C_PAD:]                            # nn.LeakyReLU(True): slope == 1.0 -> identity
    dom_logits = jnp.dot(d.astype(jnp.bfloat16), domw2_ref[...],
                         preferred_element_type=jnp.float32) + domb2_ref[...]
    dom_probs = _softmax(dom_logits)

    # Single lane-dense packed output: [class | domain | text feat | image feat].
    parts = [cls_probs[:, :C], dom_probs[:, :EV], text_h[:, :H], img_h[:, :H]]
    used = C + EV + 2 * H
    if used < OUT_PAD:
        parts.append(jnp.zeros((TB, OUT_PAD - used), jnp.float32))
    out_ref[...] = jnp.concatenate(parts, axis=-1)


def _prepare_packed_params(params, window_sizes, nf_pad):
    """Pack conv kernels into one RHS, fuse the class/domain first-layer heads,
    pad all matmul dims to multiples of 128, cast matmul weights to bf16."""
    f32, bf16 = jnp.float32, jnp.bfloat16
    KMAX = max(window_sizes)
    E = params["conv_w"][0].shape[1]
    F = params["conv_w"][0].shape[2]
    H = params["fc1_w"].shape[1]
    EV = params["dom_w2"].shape[1]
    NF = params["img_w"].shape[0]
    C = params["cls_w"].shape[1]

    F_PAD = _round_up(len(window_sizes) * F, 128)
    H_PAD = _round_up(H, 128)
    C_PAD = _round_up(C, 128)
    EV_PAD = _round_up(EV, 128)

    # Fused TextCNN weight: rows = stacked shifts (KMAX*E), cols = window-major filters.
    conv_w = jnp.zeros((KMAX * E, F_PAD), f32)
    conv_b = jnp.zeros((1, F_PAD), f32)
    for i, (K, w, b) in enumerate(zip(window_sizes, params["conv_w"], params["conv_b"])):
        conv_w = conv_w.at[:K * E, i * F:(i + 1) * F].set(w.reshape(K * E, F))
        conv_b = conv_b.at[:, i * F:(i + 1) * F].set(b)

    def pad2(w, rows, cols):
        return jnp.zeros((rows, cols), f32).at[:w.shape[0], :w.shape[1]].set(w)

    def padb(b, cols, fill=0.0):
        return jnp.full((1, cols), fill, f32).at[:, :b.shape[1]].set(b)

    # Fused class/domain first-layer head: LHS lanes are [text_h | pad | img_h | pad],
    # RHS cols are [class logits | pad to C_PAD | domain hidden | pad to H_PAD].
    head1_w = jnp.zeros((2 * H_PAD, C_PAD + H_PAD), f32)
    head1_w = head1_w.at[:H, :C].set(params["cls_w"][:H])
    head1_w = head1_w.at[H_PAD:H_PAD + H, :C].set(params["cls_w"][H:])
    head1_w = head1_w.at[:H, C_PAD:C_PAD + H].set(params["dom_w1"][:H])
    head1_w = head1_w.at[H_PAD:H_PAD + H, C_PAD:C_PAD + H].set(params["dom_w1"][H:])

    head1_b = jnp.zeros((1, C_PAD + H_PAD), f32)
    head1_b = head1_b.at[:, :C_PAD].set(_BIG_NEG)          # padded class lanes -> prob 0
    head1_b = head1_b.at[:, :C].set(params["cls_b"])
    head1_b = head1_b.at[:, C_PAD:C_PAD + H].set(params["dom_b1"])

    packed = dict(
        conv_w=conv_w.astype(bf16), conv_b=conv_b,
        fc1_w=pad2(params["fc1_w"], F_PAD, H_PAD).astype(bf16),
        fc1_b=padb(params["fc1_b"], H_PAD),
        img_w=pad2(params["img_w"], nf_pad, H_PAD).astype(bf16),
        img_b=padb(params["img_b"], H_PAD),
        head1_w=head1_w.astype(bf16),
        head1_b=head1_b,
        dom_w2=pad2(params["dom_w2"], H_PAD, EV_PAD).astype(bf16),
        dom_b2=padb(params["dom_b2"], EV_PAD, fill=_BIG_NEG),
    )
    dims = dict(F=F, H=H, C=C, EV=EV, F_PAD=F_PAD, H_PAD=H_PAD,
                C_PAD=C_PAD, EV_PAD=EV_PAD, KMAX=KMAX, E=E)
    return packed, dims


def _pick_tb(B, S_ext, S_out, E, NF_PAD, F_PAD, OUT_PAD, KMAX,
             budget_bytes=12 * 1024 * 1024):
    """Pick a batch tile that (a) fits a conservative per-core VMEM budget on all
    generations (v5e 16 MiB scoped default, v7x 64 MiB physical) and (b) gives at
    least 2 grid steps whenever the batch allows, so the "parallel" batch axis
    actually shards across both TensorCores."""
    per_row = (2 * S_ext * E * 2          # emb block, bf16, double-buffered
               + 2 * NF_PAD * 2           # image block, bf16, double-buffered
               + S_out * KMAX * E * 2     # x_stack (bf16)
               + 2 * S_out * F_PAD * 4    # conv + masked copy (f32)
               + 2 * OUT_PAD * 4          # packed output, double-buffered
               + 4096)                    # misc small intermediates
    cap = max(8, min(128, (budget_bytes // max(per_row, 1)) // 8 * 8))
    bp = _round_up(B, 8)
    cap = min(cap, bp)
    if bp > 8:
        cap = min(cap, max(8, bp // 2))   # force >= 2 grid steps
    tb = 8
    for cand in range(8, cap + 1, 8):     # largest multiple of 8 dividing bp
        if bp % cand == 0:
            tb = cand
    return tb, bp


def cnn_fusion_forward(emb_text, mask, img_feats, params, window_sizes=(1, 2, 3, 4)):
    B, S, E = emb_text.shape
    NF = img_feats.shape[1]
    F = params["conv_w"][0].shape[-1]
    KMAX = max(window_sizes)
    NF_PAD = _round_up(NF, 128)

    packed, d = _prepare_packed_params(params, window_sizes, NF_PAD)
    H, C, EV = d["H"], d["C"], d["EV"]
    F_PAD, C_PAD = d["F_PAD"], d["C_PAD"]

    S_out = _round_up(S, 8)               # conv positions padded to full sublanes
    S_ext = S_out + KMAX - 1              # extra zero rows so shifts stay in-block
    OUT_PAD = _round_up(C + EV + 2 * H, 128)

    TB, Bp = _pick_tb(B, S_ext, S_out, E, NF_PAD, F_PAD, OUT_PAD, KMAX)
    grid = (Bp // TB,)

    # emb * mask fused with the embedding gather on the JAX side; ship bf16.
    x = (emb_text * mask[:, :, None]).astype(jnp.bfloat16)
    x = jnp.pad(x, ((0, Bp - B), (0, S_ext - S), (0, 0)))
    img_p = jnp.pad(img_feats.astype(jnp.bfloat16), ((0, Bp - B), (0, NF_PAD - NF)))

    # Host-precomputed additive pool mask: -1e30 on conv positions past each
    # window's valid length (covers the S->S_out padding too), 0 elsewhere.
    pool_mask = jnp.zeros((S_out, F_PAD), jnp.float32)
    for i, K in enumerate(window_sizes):
        pool_mask = pool_mask.at[S - K + 1:, i * F:(i + 1) * F].set(_POOL_NEG)

    def resident(a):  # whole-array block, same index every step -> stays in VMEM
        n = a.ndim
        return pl.BlockSpec(a.shape, lambda i, _n=n: (0,) * _n)

    weight_order = ["conv_w", "conv_b", "fc1_w", "fc1_b", "img_w", "img_b",
                    "head1_w", "head1_b", "dom_w2", "dom_b2"]
    weights = [packed[k] for k in weight_order]

    in_specs = [
        pl.BlockSpec((TB, S_ext, E), lambda i: (i, 0, 0)),
        pl.BlockSpec((TB, NF_PAD), lambda i: (i, 0)),
        resident(pool_mask),
    ] + [resident(w) for w in weights]

    out_shape = jax.ShapeDtypeStruct((Bp, OUT_PAD), jnp.float32)
    out_specs = pl.BlockSpec((TB, OUT_PAD), lambda i: (i, 0))

    kernel = functools.partial(_cnn_fusion_kernel, C, EV, H, C_PAD)
    out = pl.pallas_call(
        kernel,
        out_shape=out_shape,
        grid=grid,
        in_specs=in_specs,
        out_specs=out_specs,
        compiler_params=pltpu.CompilerParams(
            dimension_semantics=("parallel",),
            vmem_limit_bytes=32 * 1024 * 1024),
    )(x, img_p, pool_mask, *weights)

    class_p = out[:B, :C]
    domain_p = out[:B, C:C + EV]
    text_h = out[:B, C + EV:C + EV + H]
    img_h = out[:B, C + EV + H:C + EV + 2 * H]
    return class_p, domain_p, text_h, img_h


# ---------------- pure-JAX reference (for correctness checking) ----------------
def cnn_fusion_reference(emb_text, mask, img_feats, params, window_sizes=(1, 2, 3, 4)):
    def leaky(v):
        return jnp.where(v > 0, v, NEG_SLOPE * v)

    x = emb_text * mask[:, :, None]
    pooled = []
    for K, w, b in zip(window_sizes, params["conv_w"], params["conv_b"]):
        L = x.shape[1] - K + 1
        acc = jnp.zeros((x.shape[0], L, w.shape[-1]), jnp.float32)
        for k in range(K):
            acc = acc + jnp.einsum("ble,ef->blf", x[:, k:k + L, :], w[k])
        pooled.append(jnp.max(leaky(acc + b), axis=1))
    text_feat = jnp.concatenate(pooled, axis=1)
    text_h = leaky(text_feat @ params["fc1_w"] + params["fc1_b"])
    img_h = leaky(img_feats @ params["img_w"] + params["img_b"])
    ti = jnp.concatenate([text_h, img_h], axis=1)
    cls = jax.nn.softmax(ti @ params["cls_w"] + params["cls_b"], axis=1)
    dd = ti @ params["dom_w1"] + params["dom_b1"]     # LeakyReLU(True) == identity
    dom = jax.nn.softmax(dd @ params["dom_w2"] + params["dom_b2"], axis=1)
    return cls, dom, text_h, img_h


def init_params(key, vocab_size, emb_dim, hidden, num_ftrs, event_num,
                filter_num=20, window_sizes=(1, 2, 3, 4)):
    ks = list(jax.random.split(key, 8 + 2 * len(window_sizes)))

    def linear(k, fan_in, fan_out):
        kw, kb = jax.random.split(k)
        bound = 1.0 / jnp.sqrt(jnp.float32(fan_in))
        w = jax.random.uniform(kw, (fan_in, fan_out), jnp.float32, -bound, bound)
        b = jax.random.uniform(kb, (1, fan_out), jnp.float32, -bound, bound)
        return w, b

    params = {}
    params["embed_w"] = 0.1 * jax.random.normal(ks[0], (vocab_size, emb_dim), jnp.float32)
    conv_w, conv_b = [], []
    for i, K in enumerate(window_sizes):
        kw, kb = jax.random.split(ks[1 + i])
        bound = 1.0 / jnp.sqrt(jnp.float32(K * emb_dim))
        conv_w.append(jax.random.uniform(kw, (K, emb_dim, filter_num), jnp.float32, -bound, bound))
        conv_b.append(jax.random.uniform(kb, (1, filter_num), jnp.float32, -bound, bound))
    params["conv_w"] = conv_w
    params["conv_b"] = conv_b
    params["fc1_w"], params["fc1_b"] = linear(ks[5], len(window_sizes) * filter_num, hidden)
    params["img_w"], params["img_b"] = linear(ks[6], num_ftrs, hidden)
    params["cls_w"], params["cls_b"] = linear(ks[7], 2 * hidden, 2)
    params["dom_w1"], params["dom_b1"] = linear(ks[8], 2 * hidden, hidden)
    params["dom_w2"], params["dom_b2"] = linear(ks[9], hidden, event_num)
    return params


if __name__ == "__main__":
    B, S = 2, 8
    vocab_size, emb_dim, hidden = 50, 32, 32
    num_ftrs, event_num = 64, 4   # num_ftrs stands in for vgg19 classifier out (1000)

    key = jax.random.PRNGKey(0)
    kp, kt, km, ki = jax.random.split(key, 4)

    params = init_params(kp, vocab_size, emb_dim, hidden, num_ftrs, event_num)

    text_ids = jax.random.randint(kt, (B, S), 0, vocab_size)
    mask = (jax.random.uniform(km, (B, S)) > 0.2).astype(jnp.float32)
    img_feats = jax.random.normal(ki, (B, num_ftrs), jnp.float32)

    # Embedding lookup (gather) is glue, done in plain JAX.
    emb_text = jnp.take(params["embed_w"], text_ids, axis=0)   # (B, S, E)

    outs = cnn_fusion_forward(emb_text, mask, img_feats, params)
    outs = jax.block_until_ready(outs)
    class_out, domain_out, text_h, image_h = outs

    assert class_out.shape == (B, 2)
    assert domain_out.shape == (B, event_num)
    assert text_h.shape == (B, hidden)
    assert image_h.shape == (B, hidden)
    # softmax rows sum to ~1 (exact divide now; bf16 matmuls -> still loose tol)
    assert jnp.allclose(jnp.sum(class_out, axis=1), 1.0, atol=2e-2)
    assert jnp.allclose(jnp.sum(domain_out, axis=1), 1.0, atol=2e-2)

    ref = cnn_fusion_reference(emb_text, mask, img_feats, params)
    for got, want in zip(outs, ref):
        assert jnp.allclose(got, want, rtol=5e-2, atol=5e-2), float(
            jnp.max(jnp.abs(got - want)))

    print("KERNEL_OK")
</pallas_src>

<mosaic_0001>
module attributes {stable_mosaic.version = 11 : i64} {
  func.func @_cnn_fusion_kernel(%arg0: i32, %arg1: memref<8x11x32xbf16, #tpu.memory_space<vmem>>, %arg2: memref<8x128xbf16, #tpu.memory_space<vmem>>, %arg3: memref<8x128xf32, #tpu.memory_space<vmem>>, %arg4: memref<128x128xbf16, #tpu.memory_space<vmem>>, %arg5: memref<1x128xf32, #tpu.memory_space<vmem>>, %arg6: memref<128x128xbf16, #tpu.memory_space<vmem>>, %arg7: memref<1x128xf32, #tpu.memory_space<vmem>>, %arg8: memref<128x128xbf16, #tpu.memory_space<vmem>>, %arg9: memref<1x128xf32, #tpu.memory_space<vmem>>, %arg10: memref<256x256xbf16, #tpu.memory_space<vmem>>, %arg11: memref<1x256xf32, #tpu.memory_space<vmem>>, %arg12: memref<128x128xbf16, #tpu.memory_space<vmem>>, %arg13: memref<1x128xf32, #tpu.memory_space<vmem>>, %arg14: memref<8x128xf32, #tpu.memory_space<vmem>>) attributes {dimension_semantics = [#tpu.dimension_semantics<parallel>], iteration_bounds = array<i64: 1>, scalar_prefetch = 0 : i64, scratch_operands = 0 : i64, tpu.core_type = #tpu.core_type<tc>, window_params = [{transform_indices = @transform_0, window_bounds = array<i64: 8, 11, 32>}, {transform_indices = @transform_1, window_bounds = array<i64: 8, 128>}, {pipeline_mode = #tpu.pipeline_mode<synchronous>, transform_indices = @transform_2, window_bounds = array<i64: 8, 128>}, {pipeline_mode = #tpu.pipeline_mode<synchronous>, transform_indices = @transform_3, window_bounds = array<i64: 128, 128>}, {pipeline_mode = #tpu.pipeline_mode<synchronous>, transform_indices = @transform_4, window_bounds = array<i64: 1, 128>}, {pipeline_mode = #tpu.pipeline_mode<synchronous>, transform_indices = @transform_5, window_bounds = array<i64: 128, 128>}, {pipeline_mode = #tpu.pipeline_mode<synchronous>, transform_indices = @transform_6, window_bounds = array<i64: 1, 128>}, {pipeline_mode = #tpu.pipeline_mode<synchronous>, transform_indices = @transform_7, window_bounds = array<i64: 128, 128>}, {pipeline_mode = #tpu.pipeline_mode<synchronous>, transform_indices = @transform_8, window_bounds = array<i64: 1, 128>}, {pipeline_mode = #tpu.pipeline_mode<synchronous>, transform_indices = @transform_9, window_bounds = array<i64: 256, 256>}, {pipeline_mode = #tpu.pipeline_mode<synchronous>, transform_indices = @transform_10, window_bounds = array<i64: 1, 256>}, {pipeline_mode = #tpu.pipeline_mode<synchronous>, transform_indices = @transform_11, window_bounds = array<i64: 128, 128>}, {pipeline_mode = #tpu.pipeline_mode<synchronous>, transform_indices = @transform_12, window_bounds = array<i64: 1, 128>}, {transform_indices = @transform_13, window_bounds = array<i64: 8, 128>}]} {
    %c0 = arith.constant 0 : index
    %c0_0 = arith.constant 0 : index
    %c0_1 = arith.constant 0 : index
    %0 = vector.load %arg1[%c0, %c0_0, %c0_1] : memref<8x11x32xbf16, #tpu.memory_space<vmem>>, vector<8x11x32xbf16>
    %1 = vector.extract_strided_slice %0 {offsets = [0, 0, 0], sizes = [8, 8, 32], strides = [1, 1, 1]} : vector<8x11x32xbf16> to vector<8x8x32xbf16>
    %2 = vector.extract_strided_slice %0 {offsets = [0, 1, 0], sizes = [8, 8, 32], strides = [1, 1, 1]} : vector<8x11x32xbf16> to vector<8x8x32xbf16>
    %3 = vector.extract_strided_slice %0 {offsets = [0, 2, 0], sizes = [8, 8, 32], strides = [1, 1, 1]} : vector<8x11x32xbf16> to vector<8x8x32xbf16>
    %4 = vector.extract_strided_slice %0 {offsets = [0, 3, 0], sizes = [8, 8, 32], strides = [1, 1, 1]} : vector<8x11x32xbf16> to vector<8x8x32xbf16>
    %5 = tpu.concatenate %1, %2, %3, %4 in 2 : vector<8x8x32xbf16>, vector<8x8x32xbf16>, vector<8x8x32xbf16>, vector<8x8x32xbf16> -> vector<8x8x128xbf16>
    %6 = vector.shape_cast %5 : vector<8x8x128xbf16> to vector<64x128xbf16>
    %c0_2 = arith.constant 0 : index
    %c0_3 = arith.constant 0 : index
    %7 = vector.load %arg4[%c0_2, %c0_3] : memref<128x128xbf16, #tpu.memory_space<vmem>>, vector<128x128xbf16>
    %cst = arith.constant dense<0.000000e+00> : vector<64x128xf32>
    %8 = tpu.matmul %6, %7, %cst {dimension_numbers = #tpu.dot_dimension_numbers<[1], [0], [0], [1], [0, 0, 1, 1], [], []>} : vector<64x128xbf16>, vector<128x128xbf16>, vector<64x128xf32> -> vector<64x128xf32>
    %9 = vector.shape_cast %8 : vector<64x128xf32> to vector<8x8x128xf32>
    %c0_4 = arith.constant 0 : index
    %c0_5 = arith.constant 0 : index
    %10 = vector.load %arg3[%c0_4, %c0_5] : memref<8x128xf32, #tpu.memory_space<vmem>>, vector<8x128xf32>
    %11 = vector.shape_cast %10 : vector<8x128xf32> to vector<1x8x128xf32>
    %12 = vector.broadcast %11 : vector<1x8x128xf32> to vector<8x8x128xf32>
    %13 = arith.addf %9, %12 : vector<8x8x128xf32>
    %cst_6 = arith.constant dense<0xFF800000> : vector<8x128xf32>
    %14 = vector.multi_reduction <maximumf>, %13, %cst_6 [1] : vector<8x8x128xf32> to vector<8x128xf32>
    %c0_7 = arith.constant 0 : index
    %c0_8 = arith.constant 0 : index
    %15 = vector.load %arg5[%c0_7, %c0_8] : memref<1x128xf32, #tpu.memory_space<vmem>>, vector<1x128xf32>
    %16 = vector.broadcast %15 : vector<1x128xf32> to vector<8x128xf32>
    %17 = arith.addf %14, %16 : vector<8x128xf32>
    %cst_9 = arith.constant 0.000000e+00 : f32
    %18 = vector.broadcast %cst_9 : f32 to vector<8x128xf32>
    %19 = arith.cmpf ogt, %17, %18 : vector<8x128xf32>
    %cst_10 = arith.constant 0.00999999977 : f32
    %20 = vector.broadcast %cst_10 : f32 to vector<8x128xf32>
    %21 = arith.mulf %20, %17 : vector<8x128xf32>
    %22 = arith.select %19, %17, %21 : vector<8x128xi1>, vector<8x128xf32>
    %23 = arith.truncf %22 : vector<8x128xf32> to vector<8x128xbf16>
    %c0_11 = arith.constant 0 : index
    %c0_12 = arith.constant 0 : index
    %24 = vector.load %arg6[%c0_11, %c0_12] : memref<128x128xbf16, #tpu.memory_space<vmem>>, vector<128x128xbf16>
    %cst_13 = arith.constant dense<0.000000e+00> : vector<8x128xf32>
    %25 = tpu.matmul %23, %24, %cst_13 {dimension_numbers = #tpu.dot_dimension_numbers<[1], [0], [0], [1], [0, 0, 1, 1], [], []>} : vector<8x128xbf16>, vector<128x128xbf16>, vector<8x128xf32> -> vector<8x128xf32>
    %c0_14 = arith.constant 0 : index
    %c0_15 = arith.constant 0 : index
    %26 = vector.load %arg7[%c0_14, %c0_15] : memref<1x128xf32, #tpu.memory_space<vmem>>, vector<1x128xf32>
    %27 = vector.broadcast %26 : vector<1x128xf32> to vector<8x128xf32>
    %28 = arith.addf %25, %27 : vector<8x128xf32>
    %cst_16 = arith.constant 0.000000e+00 : f32
    %29 = vector.broadcast %cst_16 : f32 to vector<8x128xf32>
    %30 = arith.cmpf ogt, %28, %29 : vector<8x128xf32>
    %cst_17 = arith.constant 0.00999999977 : f32
    %31 = vector.broadcast %cst_17 : f32 to vector<8x128xf32>
    %32 = arith.mulf %31, %28 : vector<8x128xf32>
    %33 = arith.select %30, %28, %32 : vector<8x128xi1>, vector<8x128xf32>
    %c0_18 = arith.constant 0 : index
    %c0_19 = arith.constant 0 : index
    %34 = vector.load %arg2[%c0_18, %c0_19] : memref<8x128xbf16, #tpu.memory_space<vmem>>, vector<8x128xbf16>
    %c0_20 = arith.constant 0 : index
    %c0_21 = arith.constant 0 : index
    %35 = vector.load %arg8[%c0_20, %c0_21] : memref<128x128xbf16, #tpu.memory_space<vmem>>, vector<128x128xbf16>
    %cst_22 = arith.constant dense<0.000000e+00> : vector<8x128xf32>
    %36 = tpu.matmul %34, %35, %cst_22 {dimension_numbers = #tpu.dot_dimension_numbers<[1], [0], [0], [1], [0, 0, 1, 1], [], []>} : vector<8x128xbf16>, vector<128x128xbf16>, vector<8x128xf32> -> vector<8x128xf32>
    %c0_23 = arith.constant 0 : index
    %c0_24 = arith.constant 0 : index
    %37 = vector.load %arg9[%c0_23, %c0_24] : memref<1x128xf32, #tpu.memory_space<vmem>>, vector<1x128xf32>
    %38 = vector.broadcast %37 : vector<1x128xf32> to vector<8x128xf32>
    %39 = arith.addf %36, %38 : vector<8x128xf32>
    %cst_25 = arith.constant 0.000000e+00 : f32
    %40 = vector.broadcast %cst_25 : f32 to vector<8x128xf32>
    %41 = arith.cmpf ogt, %39, %40 : vector<8x128xf32>
    %cst_26 = arith.constant 0.00999999977 : f32
    %42 = vector.broadcast %cst_26 : f32 to vector<8x128xf32>
    %43 = arith.mulf %42, %39 : vector<8x128xf32>
    %44 = arith.select %41, %39, %43 : vector<8x128xi1>, vector<8x128xf32>
    %45 = arith.truncf %33 : vector<8x128xf32> to vector<8x128xbf16>
    %46 = arith.truncf %44 : vector<8x128xf32> to vector<8x128xbf16>
    %47 = tpu.concatenate %45, %46 in 1 : vector<8x128xbf16>, vector<8x128xbf16> -> vector<8x256xbf16>
    %c0_27 = arith.constant 0 : index
    %c0_28 = arith.constant 0 : index
    %48 = vector.load %arg10[%c0_27, %c0_28] : memref<256x256xbf16, #tpu.memory_space<vmem>>, vector<256x256xbf16>
    %cst_29 = arith.constant dense<0.000000e+00> : vector<8x256xf32>
    %49 = tpu.matmul %47, %48, %cst_29 {dimension_numbers = #tpu.dot_dimension_numbers<[1], [0], [0], [1], [0, 0, 1, 1], [], []>} : vector<8x256xbf16>, vector<256x256xbf16>, vector<8x256xf32> -> vector<8x256xf32>
    %c0_30 = arith.constant 0 : index
    %c0_31 = arith.constant 0 : index
    %50 = vector.load %arg11[%c0_30, %c0_31] : memref<1x256xf32, #tpu.memory_space<vmem>>, vector<1x256xf32>
    %51 = vector.broadcast %50 : vector<1x256xf32> to vector<8x256xf32>
    %52 = arith.addf %49, %51 : vector<8x256xf32>
    %53 = vector.extract_strided_slice %52 {offsets = [0, 0], sizes = [8, 128], strides = [1, 1]} : vector<8x256xf32> to vector<8x128xf32>
    %cst_32 = arith.constant dense<0xFF800000> : vector<8xf32>
    %54 = vector.multi_reduction <maximumf>, %53, %cst_32 [1] : vector<8x128xf32> to vector<8xf32>
    %55 = vector.shape_cast %54 : vector<8xf32> to vector<8x1xf32>
    %56 = vector.broadcast %55 : vector<8x1xf32> to vector<8x128xf32>
    %57 = arith.subf %53, %56 : vector<8x128xf32>
    %58 = math.exp %57 : vector<8x128xf32>
    %cst_33 = arith.constant dense<0.000000e+00> : vector<8xf32>
    %59 = vector.multi_reduction <add>, %58, %cst_33 [1] : vector<8x128xf32> to vector<8xf32>
    %60 = vector.shape_cast %59 : vector<8xf32> to vector<8x1xf32>
    %61 = vector.broadcast %60 : vector<8x1xf32> to vector<8x128xf32>
    %62 = arith.divf %58, %61 : vector<8x128xf32>
    %63 = vector.extract_strided_slice %52 {offsets = [0, 128], sizes = [8, 128], strides = [1, 1]} : vector<8x256xf32> to vector<8x128xf32>
    %64 = arith.truncf %63 : vector<8x128xf32> to vector<8x128xbf16>
    %c0_34 = arith.constant 0 : index
    %c0_35 = arith.constant 0 : index
    %65 = vector.load %arg12[%c0_34, %c0_35] : memref<128x128xbf16, #tpu.memory_space<vmem>>, vector<128x128xbf16>
    %cst_36 = arith.constant dense<0.000000e+00> : vector<8x128xf32>
    %66 = tpu.matmul %64, %65, %cst_36 {dimension_numbers = #tpu.dot_dimension_numbers<[1], [0], [0], [1], [0, 0, 1, 1], [], []>} : vector<8x128xbf16>, vector<128x128xbf16>, vector<8x128xf32> -> vector<8x128xf32>
    %c0_37 = arith.constant 0 : index
    %c0_38 = arith.constant 0 : index
    %67 = vector.load %arg13[%c0_37, %c0_38] : memref<1x128xf32, #tpu.memory_space<vmem>>, vector<1x128xf32>
    %68 = vector.broadcast %67 : vector<1x128xf32> to vector<8x128xf32>
    %69 = arith.addf %66, %68 : vector<8x128xf32>
    %cst_39 = arith.constant dense<0xFF800000> : vector<8xf32>
    %70 = vector.multi_reduction <maximumf>, %69, %cst_39 [1] : vector<8x128xf32> to vector<8xf32>
    %71 = vector.shape_cast %70 : vector<8xf32> to vector<8x1xf32>
    %72 = vector.broadcast %71 : vector<8x1xf32> to vector<8x128xf32>
    %73 = arith.subf %69, %72 : vector<8x128xf32>
    %74 = math.exp %73 : vector<8x128xf32>
    %cst_40 = arith.constant dense<0.000000e+00> : vector<8xf32>
    %75 = vector.multi_reduction <add>, %74, %cst_40 [1] : vector<8x128xf32> to vector<8xf32>
    %76 = vector.shape_cast %75 : vector<8xf32> to vector<8x1xf32>
    %77 = vector.broadcast %76 : vector<8x1xf32> to vector<8x128xf32>
    %78 = arith.divf %74, %77 : vector<8x128xf32>
    %79 = vector.extract_strided_slice %62 {offsets = [0, 0], sizes = [8, 2], strides = [1, 1]} : vector<8x128xf32> to vector<8x2xf32>
    %80 = vector.extract_strided_slice %78 {offsets = [0, 0], sizes = [8, 4], strides = [1, 1]} : vector<8x128xf32> to vector<8x4xf32>
    %81 = vector.extract_strided_slice %33 {offsets = [0, 0], sizes = [8, 32], strides = [1, 1]} : vector<8x128xf32> to vector<8x32xf32>
    %82 = vector.extract_strided_slice %44 {offsets = [0, 0], sizes = [8, 32], strides = [1, 1]} : vector<8x128xf32> to vector<8x32xf32>
    %cst_41 = arith.constant 0.000000e+00 : f32
    %83 = vector.broadcast %cst_41 : f32 to vector<8x58xf32>
    %84 = tpu.concatenate %79, %80, %81, %82, %83 in 1 : vector<8x2xf32>, vector<8x4xf32>, vector<8x32xf32>, vector<8x32xf32>, vector<8x58xf32> -> vector<8x128xf32>
    %c0_42 = arith.constant 0 : index
    %c0_43 = arith.constant 0 : index
    %85 = vector.load %arg14[%c0_42, %c0_43] : memref<8x128xf32, #tpu.memory_space<vmem>>, vector<8x128xf32>
    tpu.vector_store %arg14[%c0_42, %c0_43], %84 {strides = array<i32>} : memref<8x128xf32, #tpu.memory_space<vmem>>, vector<8x128xf32>,
    return
  }
  func.func @transform_0(%arg0: i32) -> (i32, i32, i32) {
    %c0_i32 = arith.constant 0 : i32
    %c0_i32_0 = arith.constant 0 : i32
    %c0_i32_1 = arith.constant 0 : i32
    return %arg0, %c0_i32, %c0_i32_0 : i32, i32, i32
  }
  func.func @transform_1(%arg0: i32) -> (i32, i32) {
    %c0_i32 = arith.constant 0 : i32
    %c0_i32_0 = arith.constant 0 : i32
    return %arg0, %c0_i32 : i32, i32
  }
  func.func @transform_2(%arg0: i32) -> (i32, i32) {
    %c0_i32 = arith.constant 0 : i32
    %c0_i32_0 = arith.constant 0 : i32
    %c0_i32_1 = arith.constant 0 : i32
    return %c0_i32, %c0_i32_0 : i32, i32
  }
  func.func @transform_3(%arg0: i32) -> (i32, i32) {
    %c0_i32 = arith.constant 0 : i32
    %c0_i32_0 = arith.constant 0 : i32
    %c0_i32_1 = arith.constant 0 : i32
    return %c0_i32, %c0_i32_0 : i32, i32
  }
  func.func @transform_4(%arg0: i32) -> (i32, i32) {
    %c0_i32 = arith.constant 0 : i32
    %c0_i32_0 = arith.constant 0 : i32
    %c0_i32_1 = arith.constant 0 : i32
    return %c0_i32, %c0_i32_0 : i32, i32
  }
  func.func @transform_5(%arg0: i32) -> (i32, i32) {
    %c0_i32 = arith.constant 0 : i32
    %c0_i32_0 = arith.constant 0 : i32
    %c0_i32_1 = arith.constant 0 : i32
    return %c0_i32, %c0_i32_0 : i32, i32
  }
  func.func @transform_6(%arg0: i32) -> (i32, i32) {
    %c0_i32 = arith.constant 0 : i32
    %c0_i32_0 = arith.constant 0 : i32
    %c0_i32_1 = arith.constant 0 : i32
    return %c0_i32, %c0_i32_0 : i32, i32
  }
  func.func @transform_7(%arg0: i32) -> (i32, i32) {
    %c0_i32 = arith.constant 0 : i32
    %c0_i32_0 = arith.constant 0 : i32
    %c0_i32_1 = arith.constant 0 : i32
    return %c0_i32, %c0_i32_0 : i32, i32
  }
  func.func @transform_8(%arg0: i32) -> (i32, i32) {
    %c0_i32 = arith.constant 0 : i32
    %c0_i32_0 = arith.constant 0 : i32
    %c0_i32_1 = arith.constant 0 : i32
    return %c0_i32, %c0_i32_0 : i32, i32
  }
  func.func @transform_9(%arg0: i32) -> (i32, i32) {
    %c0_i32 = arith.constant 0 : i32
    %c0_i32_0 = arith.constant 0 : i32
    %c0_i32_1 = arith.constant 0 : i32
    return %c0_i32, %c0_i32_0 : i32, i32
  }
  func.func @transform_10(%arg0: i32) -> (i32, i32) {
    %c0_i32 = arith.constant 0 : i32
    %c0_i32_0 = arith.constant 0 : i32
    %c0_i32_1 = arith.constant 0 : i32
    return %c0_i32, %c0_i32_0 : i32, i32
  }
  func.func @transform_11(%arg0: i32) -> (i32, i32) {
    %c0_i32 = arith.constant 0 : i32
    %c0_i32_0 = arith.constant 0 : i32
    %c0_i32_1 = arith.constant 0 : i32
    return %c0_i32, %c0_i32_0 : i32, i32
  }
  func.func @transform_12(%arg0: i32) -> (i32, i32) {
    %c0_i32 = arith.constant 0 : i32
    %c0_i32_0 = arith.constant 0 : i32
    %c0_i32_1 = arith.constant 0 : i32
    return %c0_i32, %c0_i32_0 : i32, i32
  }
  func.func @transform_13(%arg0: i32) -> (i32, i32) {
    %c0_i32 = arith.constant 0 : i32
    %c0_i32_0 = arith.constant 0 : i32
    return %arg0, %c0_i32 : i32, i32
  }
}

</mosaic_0001>

<bundles_post_ra>
// kernel: tpu_custom_call.1
= control target key start
LH: loop header
LB: loop body
LE: loop exit
PB: predicated region body
PF: predicated region fallthrough
CT: control target
= control target key end

     0   :  { %18 = vsyncpa [#allocation3], 0  ;;  %s2247_s0 = inlined_call_operand.vmem [shape: bf16[8,11,32], index: 0, kind: input, shape index: {}]   ;;  %s2248_s1 = inlined_call_operand.hbm [shape: bf16[8,128], index: 1, kind: input, shape index: {}]   ;;  %s2249_s2 = inlined_call_operand.hbm [shape: f32[8,128], index: 2, kind: input, shape index: {}]   ;;  %s2250_s3 = inlined_call_operand.vmem [shape: bf16[128,128], index: 3, kind: input, shape index: {}]   ;;  %s2251_s4 = inlined_call_operand.hbm [shape: f32[1,128], index: 4, kind: input, shape index: {}]   ;;  %s2252_s5 = inlined_call_operand.hbm [shape: bf16[128,128], index: 5, kind: input, shape index: {}]   ;;  %s2253_s6 = inlined_call_operand.hbm [shape: f32[1,128], index: 6, kind: input, shape index: {}]   ;;  %s2254_s7 = inlined_call_operand.hbm [shape: bf16[128,128], index: 7, kind: input, shape index: {}]   ;;  %s2255_s8 = inlined_call_operand.hbm [shape: f32[1,128], index: 8, kind: input, shape index: {}]   ;;  %s2256_s9 = inlined_call_operand.hbm [shape: bf16[256,256], index: 9, kind: input, shape index: {}]   ;;  %s2257_s10 = inlined_call_operand.hbm [shape: f32[1,256], index: 10, kind: input, shape index: {}]   ;;  %s2258_s11 = inlined_call_operand.vmem [shape: bf16[128,128], index: 11, kind: input, shape index: {}]   ;;  %s2259_s12 = inlined_call_operand.vmem [shape: f32[1,128], index: 12, kind: input, shape index: {}]   ;;  %s2260_s13 = inlined_call_operand.hbm [shape: f32[8,128], index: 13, kind: output, shape index: {}]  }
   0x1   :  { %19 = vsyncpa [#allocation6], 0 }
   0x2   :  { %20 = vsyncpa [#allocation9], 0 }
   0x3   :  { %21 = vsyncpa [#allocation12], 0 }
   0x4   :  { %22 = vsyncpa [#allocation15], 0 }
   0x5   :  { %23 = vsyncpa [#allocation4], 0  ;;  %s1881_s25 = smov [#allocation5]   ;;  %s1882_s27 = smov [#allocation8]  }
   0x6   :  { %s42_s26 = sshll.u32 %s1881_s25, 4  ;;  %s63_s28 = sshll.u32 %s1882_s27, 4  ;;  %s43_s26 = int_to_ptr.vmem [resolvable:$true] %s42_s26  ;;  %s64_s28 = int_to_ptr.vmem [resolvable:$true] %s63_s28 }
   0x7   :  { %s1677_s29 = scalar_lea.vmem %s43_s26, 128  ;;  %p1682_p1 = scmp.lt.s32.totalorder %s43_s26, %s43_s26 }
   0x8   :  { %p1678_p0 = scmp.ne.s32.totalorder %s43_s26, %s1677_s29  ;;  %p1683_p2 = scmp.lt.s32.totalorder %s1677_s29, %s1677_s29 }
   0xa   :  { %p1684_p3 = por %p1683_p2, %p1682_p1 }
   0xc   :  { %p1685_p4 = pnand %p1684_p3, %p1678_p0 }
   0xe   :  { %1688 = shalt.err (!%p1685_p4)
}
   0xf   :  { %45 = dma.hbm_to_vmem [thread:$0]  %s2249_s2, 128, %s43_s26, [#allocation6]  }
  0x10   :  { %s1697_s15 = scalar_lea.vmem %s64_s28, 1024  ;;  %p1702_p6 = scmp.lt.s32.totalorder %s64_s28, %s64_s28 }
  0x11   :  { %p1698_p5 = scmp.ne.s32.totalorder %s64_s28, %s1697_s15  ;;  %p1703_p7 = scmp.lt.s32.totalorder %s1697_s15, %s1697_s15 }
  0x13   :  { %p1704_p8 = por %p1703_p7, %p1702_p6 }
  0x15   :  { %p1705_p9 = pnand %p1704_p8, %p1698_p5 }
  0x17   :  { %1708 = shalt.err (!%p1705_p9)
}
  0x18   :  { %s1883_s16 = smov 64   ;;  %s1884_s17 = smov 4  }
  0x19   :  { %69 = dma.hbm_to_vmem [thread:$0]  %s2252_s5, 1024, %s64_s28, [#allocation9], %s1883_s16, %s1883_s16, %s1884_s17  }
  0x1a   :  { %s1885_s20 = smov [#allocation11]   ;;  %s1886_s22 = smov [#allocation14]  }
  0x1b   :  { %s85_s21 = sshll.u32 %s1885_s20, 4  ;;  %s107_s23 = sshll.u32 %s1886_s22, 4  ;;  %s86_s21 = int_to_ptr.vmem [resolvable:$true] %s85_s21  ;;  %s108_s23 = int_to_ptr.vmem [resolvable:$true] %s107_s23 }
  0x1c   :  { %s1717_s2 = scalar_lea.vmem %s86_s21, 1024  ;;  %p1722_p11 = scmp.lt.s32.totalorder %s86_s21, %s86_s21 }
  0x1d   :  { %p1718_p10 = scmp.ne.s32.totalorder %s86_s21, %s1717_s2  ;;  %p1723_p12 = scmp.lt.s32.totalorder %s1717_s2, %s1717_s2 }
  0x1f   :  { %p1724_p13 = por %p1723_p12, %p1722_p11 }
  0x21   :  { %p1725_p0 = pnand %p1724_p13, %p1718_p10 }
  0x23   :  { %1728 = shalt.err (!%p1725_p0)
}
  0x24   :  { %91 = dma.hbm_to_vmem [thread:$0]  %s2254_s7, 1024, %s86_s21, [#allocation12], %s1883_s16, %s1883_s16, %s1884_s17  }
  0x25   :  { %s1737_s5 = scalar_lea.vmem %s108_s23, 4096  ;;  %p1742_p2 = scmp.lt.s32.totalorder %s108_s23, %s108_s23 }
  0x26   :  { %p1738_p1 = scmp.ne.s32.totalorder %s108_s23, %s1737_s5  ;;  %p1743_p3 = scmp.lt.s32.totalorder %s1737_s5, %s1737_s5 }
  0x28   :  { %p1744_p4 = por %p1743_p3, %p1742_p2 }
  0x2a   :  { %p1745_p5 = pnand %p1744_p4, %p1738_p1 }
  0x2c   :  { %1748 = shalt.err (!%p1745_p5)
}
  0x2d   :  { %s1887_s26 = smov 128   ;;  %s1888_s27 = smov 8  }
  0x2e   :  { %113 = dma.hbm_to_vmem [thread:$0]  %s2256_s9, 4096, %s108_s23, [#allocation15], %s1887_s26, %s1887_s26, %s1888_s27  }
  0x2f   :  { %s1889_s30 = smov [#allocation2]   ;;  %s1890_s15 = smov [#allocation7]  }
  0x30   :  { %s32_s14 = sshll.u32 %s1889_s30, 4  ;;  %s54_s18 = sshll.u32 %s1890_s15, 4  ;;  %s33_s14 = int_to_ptr.vmem [resolvable:$true] %s32_s14  ;;  %s55_s18 = int_to_ptr.vmem [resolvable:$true] %s54_s18 }
  0x31   :  { %s1757_s7 = scalar_lea.vmem %s33_s14, 64  ;;  %p1762_p7 = scmp.lt.s32.totalorder %s33_s14, %s33_s14 }
  0x32   :  { %p1758_p6 = scmp.ne.s32.totalorder %s33_s14, %s1757_s7  ;;  %p1763_p8 = scmp.lt.s32.totalorder %s1757_s7, %s1757_s7 }
  0x34   :  { %p1764_p9 = por %p1763_p8, %p1762_p7 }
  0x36   :  { %p1765_p10 = pnand %p1764_p9, %p1758_p6 }
  0x38   :  { %1768 = shalt.err (!%p1765_p10)
}
  0x39   :  { %35 = dma.hbm_to_vmem [thread:$0]  %s2248_s1, 64, %s33_s14, [#allocation3]  }
  0x3a   :  { %s1777_s20 = scalar_lea.vmem %s55_s18, 16  ;;  %s1781_s9 = scalar_lea.vmem %s55_s18, 32 }
  0x3b   :  { %p1778_p11 = scmp.ne.s32.totalorder %s55_s18, %s1777_s20  ;;  %p1782_p12 = scmp.lt.s32.totalorder %s55_s18, %s55_s18 }
  0x3c   :  { %p1783_p13 = scmp.lt.s32.totalorder %s1781_s9, %s1777_s20 }
  0x3e   :  { %p1784_p0 = por %p1783_p13, %p1782_p12 }
  0x40   :  { %p1785_p1 = pnand %p1784_p0, %p1778_p11 }
  0x42   :  { %1788 = shalt.err (!%p1785_p1)
}
  0x43   :  { %57 = dma.hbm_to_vmem [thread:$0]  %s2251_s4, 16, %s55_s18, [#allocation6]  }
  0x44   :  { %s1891_s23 = smov [#allocation10]   ;;  %s1892_s24 = smov [#allocation13]  }
  0x45   :  { %s76_s2 = sshll.u32 %s1891_s23, 4  ;;  %s98_s25 = sshll.u32 %s1892_s24, 4  ;;  %s77_s2 = int_to_ptr.vmem [resolvable:$true] %s76_s2  ;;  %s99_s25 = int_to_ptr.vmem [resolvable:$true] %s98_s25 }
  0x46   :  { %s1797_s5 = scalar_lea.vmem %s77_s2, 16  ;;  %s1801_s1 = scalar_lea.vmem %s77_s2, 32 }
  0x47   :  { %p1798_p2 = scmp.ne.s32.totalorder %s77_s2, %s1797_s5  ;;  %p1802_p3 = scmp.lt.s32.totalorder %s77_s2, %s77_s2 }
  0x48   :  { %p1803_p4 = scmp.lt.s32.totalorder %s1801_s1, %s1797_s5 }
  0x4a   :  { %p1804_p5 = por %p1803_p4, %p1802_p3 }
  0x4c   :  { %p1805_p6 = pnand %p1804_p5, %p1798_p2 }
  0x4e   :  { %1808 = shalt.err (!%p1805_p6)
}
  0x4f   :  { %79 = dma.hbm_to_vmem [thread:$0]  %s2253_s6, 16, %s77_s2, [#allocation9]  }
  0x50   :  { %s1817_s28 = scalar_lea.vmem %s99_s25, 16  ;;  %s1821_s4 = scalar_lea.vmem %s99_s25, 32 }
  0x51   :  { %p1818_p7 = scmp.ne.s32.totalorder %s99_s25, %s1817_s28  ;;  %p1822_p8 = scmp.lt.s32.totalorder %s99_s25, %s99_s25 }
  0x52   :  { %p1823_p9 = scmp.lt.s32.totalorder %s1821_s4, %s1817_s28 }
  0x54   :  { %p1824_p10 = por %p1823_p9, %p1822_p8 }
  0x56   :  { %p1825_p11 = pnand %p1824_p10, %p1818_p7 }
  0x58   :  { %1828 = shalt.err (!%p1825_p11)
}
  0x59   :  { %101 = dma.hbm_to_vmem [thread:$0]  %s2255_s8, 16, %s99_s25, [#allocation12]  }
  0x5a   :  { %s1893_s14 = smov [#allocation16]  }
  0x5b   :  { %s120_s15 = sshll.u32 %s1893_s14, 4  ;;  %s121_s15 = int_to_ptr.vmem [resolvable:$true] %s120_s15 }
  0x5c   :  { %s1837_s18 = scalar_lea.vmem %s121_s15, 32  ;;  %p1842_p13 = scmp.lt.s32.totalorder %s121_s15, %s121_s15 }
  0x5d   :  { %p1838_p12 = scmp.ne.s32.totalorder %s121_s15, %s1837_s18  ;;  %p1843_p0 = scmp.lt.s32.totalorder %s1837_s18, %s1837_s18 }
  0x5f   :  { %p1844_p1 = por %p1843_p0, %p1842_p13 }
  0x61   :  { %p1845_p2 = pnand %p1844_p1, %p1838_p12 }
  0x63   :  { %1848 = shalt.err (!%p1845_p2)
}
  0x64   :  { %123 = dma.hbm_to_vmem [thread:$0]  %s2257_s10, 32, %s121_s15, [#allocation15]  }
  0x65   :  { %1869 = dma.done.wait [#allocation3], 64  }
  0x66   :  { %1870 = vsyncadd [#allocation3], 4294967232 }
  0x67   :  { %1871 = dma.done.wait [#allocation6], 144  }
  0x68   :  { %1872 = vsyncadd [#allocation6], 4294967152 }
  0x69   :  { %1873 = dma.done.wait [#allocation9], 1040  }
  0x6a   :  { %1874 = vsyncadd [#allocation9], 4294966256 }
  0x6b   :  { %1875 = dma.done.wait [#allocation12], 1040  }
  0x6c   :  { %1876 = vsyncadd [#allocation12], 4294966256 }
  0x6d   :  { %1877 = dma.done.wait [#allocation15], 4128  }
  0x6e   :  { %1878 = vsyncadd [#allocation15], 4294963168  ;;  %v2006_v0 = vld [vmem:[%s2247_s0 + $0x8] sm:$0xf]  ;;  %v159_v1 = vld [vmem:[%s2247_s0 + $0xc] sm:$0x3] }
  0x6f   :  { %v2014_v2 = vld [vmem:[%s2247_s0] sm:$0xf]  ;;  %v1350_v3 = vcombine.low %v2006_v0, %v159_v1  ;;  %v157_v4 = vld [vmem:[%s2247_s0 + $0x4] sm:$0x3]  ;;  %v2023_v5 = vld [vmem:[%s2247_s0 + $0x18] sm:$0xf] }
  0x70   :  { %v163_v6 = vld [vmem:[%s2247_s0 + $0x1c] sm:$0x3]  ;;  %v1349_v7 = vcombine.low %v2014_v2, %v157_v4  ;;  %v2033_v9 = vld [vmem:[%s2247_s0 + $0x10] sm:$0xf]  ;;  %v161_v10 = vld [vmem:[%s2247_s0 + $0x14] sm:$0x3] }
  0x71   :  { %v1352_v8 = vcombine.low %v2023_v5, %v163_v6  ;;  %v285_v11 = vrot.slane %v1350_v3, 1  ;;  %v1351_v12 = vcombine.low %v2033_v9, %v161_v10  ;;  %v1581_v13 = vld [vmem:[%s2250_s3 + $0x38] sm:$0xff]   ;;  %v222_v19 = vshll.u32 %v1350_v3, 16  ;;  %v2046_v20 = vld [vmem:[%s2247_s0 + $0x28] sm:$0xf]  ;;  %v1582_v36 = vld [vmem:[%s2250_s3 + $0x30] sm:$0xff]  }
  0x72   :  { %v284_v14 = vrot.slane %v1349_v7, 1  ;;  %v215_v15 = vshll.u32 %v1349_v7, 16  ;;  %v167_v21 = vld [vmem:[%s2247_s0 + $0x2c] sm:$0x3]  ;;  %1468 = vmatprep.subr.bf16.mxu0 %v1581_v13  ;;  %v213_v23 = vshrl.u32 %v1349_v7, 16  ;;  %v220_v38 = vshrl.u32 %v1350_v3, 16 }
  0x73   :  { %294 = vrot.lane.b32.xlu1 %v285_v11, %s1883_s16  ;;  %v287_v16 = vrot.slane %v1352_v8, 1  ;;  %v227_v17 = vshrl.u32 %v1351_v12, 16  ;;  %v229_v18 = vshll.u32 %v1351_v12, 16  ;;  %v286_v22 = vrot.slane %v1351_v12, 1  ;;  %v2055_v26 = vld [vmem:[%s2247_s0 + $0x20] sm:$0xf]  ;;  %1469 = vmatpush3.bf16.msra.mxu0 %v1581_v13 }
  0x74   :  { %292 = vrot.lane.b32.xlu0 %v284_v14, %s1883_s16  ;;  %v217_v24 = vrot.slane %v215_v15, 1  ;;  %v236_v25 = vshll.u32 %v1352_v8, 16  ;;  %v234_v28 = vshrl.u32 %v1352_v8, 16  ;;  %v165_v29 = vld [vmem:[%s2247_s0 + $0x24] sm:$0x3]  ;;  %v224_v39 = vrot.slane %v222_v19, 1  ;;  %1470 = vmatprep.subr.bf16.mxu0 %v1582_v36 }
  0x75   :  { %v231_v27 = vrot.slane %v229_v18, 1  ;;  %v2063_v30 = vld [vmem:[%s2247_s0 + $0x38] sm:$0xf]  ;;  %v171_v31 = vld [vmem:[%s2247_s0 + $0x3c] sm:$0x3]  ;;  %v2082_v40 = vcombine.low %v2046_v20, %v167_v21  ;;  %v2085_v41 = vcombine.low %v2055_v26, %v165_v29  ;;  %v1583_v42 = vld [vmem:[%s2250_s3 + $0x28] sm:$0xff]  }
  0x76   :  { %v2071_v32 = vld [vmem:[%s2247_s0 + $0x30] sm:$0xf]  ;;  %v169_v33 = vld [vmem:[%s2247_s0 + $0x34] sm:$0x3]  ;;  %v238_v35 = vrot.slane %v236_v25, 1  ;;  %v218_v37 = vor.u32 %v217_v24, %v213_v23  ;;  %v2091_v43 = vcombine.low %v2063_v30, %v171_v31  ;;  %s1894_s5 = smov 32   ;;  %v225_v49 = vor.u32 %v224_v39, %v220_v38 }
  0x77   :  { %298 = vrot.lane.b32.xlu1 %v287_v16, %s1883_s16  ;;  %v232_v34 = vor.u32 %v231_v27, %v227_v17  ;;  %v2094_v44 = vcombine.low %v2071_v32, %v169_v33  ;;  %1471 = vmatpush3.bf16.msra.mxu0 %v1582_v36  ;;  %v311_v46 = vrot.slane %v220_v38, 1  ;;  %v312_v47 = vrot.slane %v222_v19, 2  ;;  %v1584_v48 = vld [vmem:[%s2250_s3 + $0x20] sm:$0xff]   ;;  %v1585_v63 = vld [vmem:[%s2250_s3 + $0x18] sm:$0xff]   ;;  %v1586_v11 = vld [vmem:[%s2250_s3 + $0x10] sm:$0xff]   ;;  %s1895_s30 = smov 96  }
  0x78   :  { %296 = vrot.lane.b32.xlu0 %v286_v22, %s1883_s16  ;;  %v239_v45 = vor.u32 %v238_v35, %v234_v28  ;;  %1472 = vmatprep.subr.bf16.mxu0 %v1583_v42  ;;  %v308_v50 = vrot.slane %v213_v23, 1  ;;  %v309_v51 = vrot.slane %v215_v15, 2  ;;  %v250_v52 = vshll.u32 %v2082_v40, 16  ;;  %v1587_v14 = vld [vmem:[%s2250_s3 + $0x8] sm:$0xff]   ;;  %s1900_s26 = smov 38   ;;  %s1901_s27 = smov [#allocation17]  }
  0x79   :  { %v317_v53 = vrot.slane %v234_v28, 1  ;;  %v243_v54 = vshll.u32 %v2085_v41, 16  ;;  %v318_v55 = vrot.slane %v236_v25, 2  ;;  %v314_v56 = vrot.slane %v227_v17, 1  ;;  %v1588_v17 = vld [vmem:[%s2250_s3] sm:$0xff]   ;;  %s1336_s28 = sshll.u32 %s1901_s27, 4  ;;  %s1337_s28 = int_to_ptr.vmem [resolvable:$true] %s1336_s28 }
  0x7a   :  { %v264_v57 = vshll.u32 %v2091_v43, 16  ;;  %v257_v58 = vshll.u32 %v2094_v44, 16  ;;  %v313_v59 = vor.u32 %v312_v47, %v311_v46  ;;  %v315_v60 = vrot.slane %v229_v18, 2  ;;  %s1849_s4 = scalar_lea.vmem %s1337_s28, 128  ;;  %p1854_p4 = scmp.lt.s32.totalorder %s1337_s28, %s1337_s28 }
  0x7b   :  { %272 = vrot.lane.b32.xlu1 %v232_v34, %s1894_s5  ;;  %1473 = vmatpush3.bf16.msra.mxu0 %v1583_v42  ;;  %v248_v61 = vshrl.u32 %v2082_v40, 16  ;;  %v241_v62 = vshrl.u32 %v2085_v41, 16  ;;  %v310_v1 = vor.u32 %v309_v51, %v308_v50  ;;  %v252_v3 = vrot.slane %v250_v52, 1  ;;  %p1850_p3 = scmp.ne.s32.totalorder %s1337_s28, %s1849_s4  ;;  %p1855_p5 = scmp.lt.s32.totalorder %s1849_s4, %s1849_s4 }
  0x7c   :  { %268 = vrot.lane.b32.xlu0 %v218_v37, %s1894_s5  ;;  %1474 = vmatprep.subr.bf16.mxu0 %v1584_v48  ;;  %v262_v4 = vshrl.u32 %v2091_v43, 16  ;;  %v245_v6 = vrot.slane %v243_v54, 1  ;;  %v255_v7 = vshrl.u32 %v2094_v44, 16  ;;  %v266_v8 = vrot.slane %v264_v57, 1 }
  0x7d   :  { %v259_v10 = vrot.slane %v257_v58, 1  ;;  %v319_v12 = vor.u32 %v318_v55, %v317_v53  ;;  %v316_v13 = vor.u32 %v315_v60, %v314_v56  ;;  %v253_v15 = vor.u32 %v252_v3, %v248_v61  ;;  %p1856_p6 = por %p1855_p5, %p1854_p4 }
  0x7e   :  { %v246_v16 = vor.u32 %v245_v6, %v241_v62  ;;  %v267_v18 = vor.u32 %v266_v8, %v262_v4  ;;  %v289_v21 = vrot.slane %v2082_v40, 1  ;;  %v288_v22 = vrot.slane %v2085_v41, 1 }
  0x7f   :  { %274 = vrot.lane.b32.xlu1 %v239_v45, %s1894_s5  ;;  %1475 = vmatpush3.bf16.msra.mxu0 %v1584_v48  ;;  %v260_v19 = vor.u32 %v259_v10, %v255_v7  ;;  %v291_v23 = vrot.slane %v2091_v43, 1  ;;  %v323_v24 = vrot.slane %v248_v61, 1  ;;  %v324_v25 = vrot.slane %v250_v52, 2  ;;  %p1857_p7 = pnand %p1856_p6, %p1850_p3 }
  0x80   :  { %270 = vrot.lane.b32.xlu0 %v225_v49, %s1894_s5  ;;  %1476 = vmatprep.subr.bf16.mxu0 %v1585_v63  ;;  %v290_v27 = vrot.slane %v2094_v44, 1  ;;  %v320_v28 = vrot.slane %v241_v62, 1  ;;  %v321_v29 = vrot.slane %v243_v54, 2  ;;  %v329_v31 = vrot.slane %v262_v4, 1 }
  0x81   :  { %v330_v33 = vrot.slane %v264_v57, 2  ;;  %v325_v34 = vor.u32 %v324_v25, %v323_v24  ;;  %v326_v35 = vrot.slane %v255_v7, 1  ;;  %v327_v36 = vrot.slane %v257_v58, 2 }
  0x82   :  { %v322_v37 = vor.u32 %v321_v29, %v320_v28  ;;  %vm348_vm0 = vcmask 261120   ;;  %vm373_vm1 = vcmask 523264   ;;  %vm390_vm2 = vcmask 785408   ;;  %v1589_v28 = vld [vmem:[#allocation11 + $0x38] sm:$0xff]  }
  0x83   :  { %334 = vrot.lane.b32.xlu1 %v313_v59, %s1895_s30  ;;  %1477 = vmatpush3.bf16.msra.mxu0 %v1585_v63  ;;  %v331_v38 = vor.u32 %v330_v33, %v329_v31  ;;  %v328_v39 = vor.u32 %v327_v36, %v326_v35  ;;  %v1896_v29 = vmov 0.0   ;;  %v1592_v31 = vld [vmem:[#allocation11 + $0x28] sm:$0xff]   ;;  %v1596_v36 = vld [vmem:[#allocation11 + $0x18] sm:$0xff]   ;;  %vm1897_vm3 = vmmov 0  }
  0x84   :  { %332 = vrot.lane.b32.xlu0 %v310_v1, %s1895_s30  ;;  %1478 = vmatprep.subr.bf16.mxu0 %v1586_v11  ;;  %v1593_v33 = vld [vmem:[#allocation8 + $0x30] sm:$0xff]   ;;  %v1595_v35 = vld [vmem:[#allocation8 + $0x28] sm:$0xff]   ;;  %vm704_vm11 = vcmask 1041409   ;;  %vm707_vm13 = vcmask 1042434   ;;  %vm710_vm14 = vcmask 1043459   ;;  %vm713_vm15 = vcmask 1044484  }
  0x85   :  { %1492 = vmatprep.subr.bf16.mxu1 %v1896_v29  ;;  %1508 = vmatprep.mubr.msk.bf16.mxu1 %vm1897_vm3, %v1896_v29 }
  0x87   :  { %338 = vrot.lane.b32.xlu1 %v319_v12, %s1895_s30  ;;  %1479 = vmatpush3.bf16.msra.mxu0 %v1586_v11 }
  0x88   :  { %336 = vrot.lane.b32.xlu0 %v316_v13, %s1895_s30  ;;  %1480 = vmatprep.subr.bf16.mxu0 %v1587_v14 }
  0x8b   :  { %278 = vrot.lane.b32.xlu1 %v253_v15, %s1894_s5  ;;  %1481 = vmatpush3.bf16.msra.mxu0 %v1587_v14 }
  0x8c   :  { %276 = vrot.lane.b32.xlu0 %v246_v16, %s1894_s5  ;;  %1482 = vmatprep.subr.bf16.mxu0 %v1588_v17 }
  0x8f   :  { %282 = vrot.lane.b32.xlu1 %v267_v18, %s1894_s5  ;;  %1483 = vmatpush3.bf16.msra.mxu0 %v1588_v17 }
  0x90   :  { %280 = vrot.lane.b32.xlu0 %v260_v19, %s1894_s5  ;;  %1512 = vmatprep.subr.bf16.mxu0 %v1896_v29 }
  0x93   :  { %302 = vrot.lane.b32.xlu1 %v289_v21, %s1883_s16 }
  0x94   :  { %300 = vrot.lane.b32.xlu0 %v288_v22, %s1883_s16 }
  0x97   :  { %306 = vrot.lane.b32.xlu1 %v291_v23, %s1883_s16 }
  0x98   :  { %304 = vrot.lane.b32.xlu0 %v290_v27, %s1883_s16 }
  0x9b   :  { %342 = vrot.lane.b32.xlu1 %v325_v34, %s1895_s30  ;;  %v1594_v34 = vld [vmem:[#allocation11 + $0x20] sm:$0xff]  }
  0x9c   :  { %340 = vrot.lane.b32.xlu0 %v322_v37, %s1895_s30  ;;  %v1597_v37 = vld [vmem:[#allocation8 + $0x20] sm:$0xff]  }
  0x9f   :  { %346 = vrot.lane.b32.xlu1 %v331_v38, %s1895_s30  ;;  %v1598_v38 = vld [vmem:[#allocation11 + $0x10] sm:$0xff]  }
  0xa0   :  { %344 = vrot.lane.b32.xlu0 %v328_v39, %s1895_s30  ;;  %v1599_v39 = vld [vmem:[#allocation8 + $0x18] sm:$0xff]  }
  0xe5   :  { %v295_v40 = vpop.permute.xlu1 %294 }
  0xe6   :  { %v293_v41 = vpop.permute.xlu0 %292 }
  0xe9   :  { %v299_v42 = vpop.permute.xlu1 %298 }
  0xea   :  { %v297_v43 = vpop.permute.xlu0 %296 }
  0xed   :  { %v273_v44 = vpop.permute.xlu1 %272 }
  0xee   :  { %v269_v45 = vpop.permute.xlu0 %268  ;;  %v357_v56 = vsel %vm348_vm0, %v2033_v9, %v273_v44  ;;  %v817_v44 = vld [vmem:[#allocation2] sm:$0xf] }
  0xef   :  { %v351_v48 = vsel %vm348_vm0, %v2014_v2, %v269_v45  ;;  %v379_v60 = vsel %vm373_vm1, %v357_v56, %v297_v43  ;;  %v1603_v43 = vld [vmem:[#allocation8 + $0x8] sm:$0xff]   ;;  %v1604_v45 = vld [vmem:[#allocation8] sm:$0xff]  }
  0xf0   :  { %v375_v54 = vsel %vm373_vm1, %v351_v48, %v293_v41  ;;  %v1601_v41 = vld [vmem:[#allocation8 + $0x10] sm:$0xff]  }
  0xf1   :  { %v275_v46 = vpop.permute.xlu1 %274 }
  0xf2   :  { %v271_v47 = vpop.permute.xlu0 %270  ;;  %v360_v52 = vsel %vm348_vm0, %v2023_v5, %v275_v46  ;;  %v1607_v46 = vld [vmem:[#allocation14 + $0x74] ss:$8 sps:$4 sm:$0xff]  }
  0xf3   :  { %v354_v49 = vsel %vm348_vm0, %v2006_v0, %v271_v47  ;;  %v381_v0 = vsel %vm373_vm1, %v360_v52, %v299_v42  ;;  %v1602_v42 = vld [vmem:[#allocation11] sm:$0xff]   ;;  %v560_v47 = vld [vmem:[#allocation5] sm:$0xff] }
  0xf4   :  { %v377_v51 = vsel %vm373_vm1, %v354_v49, %v295_v40  ;;  %v1600_v40 = vld [vmem:[#allocation11 + $0x8] sm:$0xff]  }
  0xf5   :  { %v335_v50 = vpop.permute.xlu1 %334 }
  0xf6   :  { %v333_v53 = vpop.permute.xlu0 %332  ;;  %v394_v55 = vsel %vm390_vm2, %v377_v51, %v335_v50 }
  0xf7   :  { %v392_v2 = vsel %vm390_vm2, %v375_v54, %v333_v53 }
  0xf8   :  { %v1357_v57 = vcombine.low %v392_v2, %v394_v55 }
  0xf9   :  { %v339_v58 = vpop.permute.xlu1 %338 }
  0xfa   :  { %v398_v59 = vsel %vm390_vm2, %v381_v0, %v339_v58  ;;  %1484 = vmatprep.mubr.bf16.mxu0 %v1357_v57  ;;  %v337_v5 = vpop.permute.xlu0 %336 }
  0xfb   :  { %v396_v61 = vsel %vm390_vm2, %v379_v60, %v337_v5 }
  0xfc   :  { %v1358_v62 = vcombine.low %v396_v61, %v398_v59 }
  0xfd   :  { %v279_v63 = vpop.permute.xlu1 %278 }
  0xfe   :  { %1485 = vmatmul.mubr.bf16.vlgmr.msra.gmra.mxu0 %v1358_v62  ;;  %v277_v1 = vpop.permute.xlu0 %276  ;;  %v366_v10 = vsel %vm348_vm0, %v2046_v20, %v279_v63 }
  0xff   :  { %v363_v11 = vsel %vm348_vm0, %v2055_v26, %v277_v1  ;;  %1513 = vmatpush3.bf16.msra.mxu0 %v1589_v28 }
 0x100   :  { %1514 = vmatprep.subr.bf16.mxu0 %v1896_v29 }
 0x101   :  { %v283_v3 = vpop.permute.xlu1 %282 }
 0x102   :  { %v281_v9 = vpop.permute.xlu0 %280  ;;  %v372_v18 = vsel %vm348_vm0, %v2063_v30, %v283_v3  ;;  %v1590_v30 = vld [vmem:[#allocation11 + $0x30] sm:$0xff]  }
 0x103   :  { %v369_v20 = vsel %vm348_vm0, %v2071_v32, %v281_v9  ;;  %1515 = vmatpush3.bf16.msra.mxu0 %v1590_v30  ;;  %v1591_v32 = vld [vmem:[#allocation8 + $0x38] sm:$0xff]   ;;  %vm716_vm0 = vcmask 1045509  }
 0x104   :  { %1516 = vmatprep.subr.bf16.mxu0 %v1896_v29  ;;  %1493 = vmatpush3.bf16.msra.mxu1 %v1591_v32 }
 0x105   :  { %v303_v4 = vpop.permute.xlu1 %302  ;;  %1494 = vmatprep.subr.bf16.mxu1 %v1896_v29 }
 0x106   :  { %v301_v6 = vpop.permute.xlu0 %300  ;;  %v385_v12 = vsel %vm373_vm1, %v366_v10, %v303_v4 }
 0x107   :  { %v383_v14 = vsel %vm373_vm1, %v363_v11, %v301_v6  ;;  %1517 = vmatpush3.bf16.msra.mxu0 %v1592_v31  ;;  %v2195_v11 = vld [vmem:[#allocation7] ss:$0 sm:$0xff] }
 0x108   :  { %1518 = vmatprep.subr.bf16.mxu0 %v1896_v29  ;;  %1495 = vmatpush3.bf16.msra.mxu1 %v1593_v33 }
 0x109   :  { %v307_v7 = vpop.permute.xlu1 %306  ;;  %1496 = vmatprep.subr.bf16.mxu1 %v1896_v29 }
 0x10a   :  { %v305_v8 = vpop.permute.xlu0 %304  ;;  %v389_v21 = vsel %vm373_vm1, %v372_v18, %v307_v7 }
 0x10b   :  { %v387_v22 = vsel %vm373_vm1, %v369_v20, %v305_v8  ;;  %1519 = vmatpush3.bf16.msra.mxu0 %v1594_v34  ;;  %vm719_vm1 = vcmask 1046534  }
 0x10c   :  { %1520 = vmatprep.subr.bf16.mxu0 %v1896_v29  ;;  %1497 = vmatpush3.bf16.msra.mxu1 %v1595_v35 }
 0x10d   :  { %v343_v13 = vpop.permute.xlu1 %342  ;;  %1498 = vmatprep.subr.bf16.mxu1 %v1896_v29 }
 0x10e   :  { %v402_v15 = vsel %vm390_vm2, %v385_v12, %v343_v13  ;;  %v341_v16 = vpop.permute.xlu0 %340 }
 0x10f   :  { %v400_v17 = vsel %vm390_vm2, %v383_v14, %v341_v16  ;;  %1521 = vmatpush3.bf16.msra.mxu0 %v1596_v36 }
 0x110   :  { %v1359_v19 = vcombine.low %v400_v17, %v402_v15  ;;  %1522 = vmatprep.subr.bf16.mxu0 %v1896_v29  ;;  %1499 = vmatpush3.bf16.msra.mxu1 %v1597_v37 }
 0x111   :  { %v347_v26 = vpop.permute.xlu1 %346  ;;  %1500 = vmatprep.subr.bf16.mxu1 %v1896_v29 }
 0x112   :  { %v406_v23 = vsel %vm390_vm2, %v389_v21, %v347_v26  ;;  %1488 = vmatprep.mubr.bf16.mxu0 %v1359_v19  ;;  %v345_v24 = vpop.permute.xlu0 %344 }
 0x113   :  { %v404_v25 = vsel %vm390_vm2, %v387_v22, %v345_v24  ;;  %1523 = vmatpush3.bf16.msra.mxu0 %v1598_v38  ;;  %vm722_vm2 = vcmask 1047559  }
 0x114   :  { %v1360_v27 = vcombine.low %v404_v25, %v406_v23  ;;  %1524 = vmatprep.subr.bf16.mxu0 %v1896_v29  ;;  %1501 = vmatpush3.bf16.msra.mxu1 %v1599_v39 }
 0x115   :  { %1502 = vmatprep.subr.bf16.mxu1 %v1896_v29 }
 0x116   :  { %1489 = vmatmul.mubr.bf16.gmra.mxu0 %v1360_v27 }
 0x117   :  { %1525 = vmatpush3.bf16.msra.mxu0 %v1600_v40  ;;  %1528 = vmatprep.mubr.msk.bf16.mxu0 %vm1897_vm3, %v1896_v29 }
 0x118   :  { %1526 = vmatprep.subr.bf16.mxu0 %v1896_v29  ;;  %1503 = vmatpush3.bf16.msra.mxu1 %v1601_v41 }
 0x119   :  { %1504 = vmatprep.subr.bf16.mxu1 %v1896_v29 }
 0x11b   :  { %1527 = vmatpush3.bf16.msra.mxu0 %v1602_v42 }
 0x11c   :  { %1532 = vmatprep.subr.bf16.mxu0 %v1896_v29  ;;  %1505 = vmatpush3.bf16.msra.mxu1 %v1603_v43 }
 0x11d   :  { %1506 = vmatprep.subr.bf16.mxu1 %v1896_v29 }
 0x11e   :  { %1529 = vmatmul.mubr.bf16.vlgmr.msra.gmra.mxu0 %v817_v44 }
 0x11f   :  { %1548 = vmatprep.mubr.msk.bf16.mxu0 %vm1897_vm3, %v1896_v29 }
 0x120   :  { %1507 = vmatpush3.bf16.msra.mxu1 %v1604_v45 }
 0x121   :  { %1138 = vmatprep.subr.bf16.mxu1 %v1607_v46 }
 0x1be   :  { %v1486_v48 = vpop.f32.mrf.mxu0 }
 0x1bf   :  { %v563_v49 = vadd.f32 %v1486_v48, %v560_v47 }
 0x1c0   :  { %v529_v50 = vpop.f32.mrf.mxu0 }
 0x1c1   :  { %v561_v51 = vadd.f32 %v560_v47, %v529_v50  ;;  %v581_v54 = vrot.slane %v563_v49, 4 }
 0x1c2   :  { %v1487_v52 = vpop.f32.mrf.mxu0 }
 0x1c3   :  { %v564_v53 = vadd.f32 %v1487_v52, %v560_v47  ;;  %v569_v2 = vrot.slane %v561_v51, 4  ;;  %v582_v58 = vmax.f32 %v563_v49, %v581_v54 }
 0x1c4   :  { %v532_v55 = vpop.f32.mrf.mxu0 }
 0x1c5   :  { %v562_v56 = vadd.f32 %v560_v47, %v532_v55  ;;  %v587_v57 = vrot.slane %v564_v53, 4  ;;  %v570_v60 = vmax.f32 %v561_v51, %v569_v2  ;;  %v583_v62 = vrot.slane %v582_v58, 2 }
 0x1c7   :  { %v575_v0 = vrot.slane %v562_v56, 4  ;;  %v588_v5 = vmax.f32 %v564_v53, %v587_v57  ;;  %v571_v1 = vrot.slane %v570_v60, 2  ;;  %v584_v9 = vmax.f32 %v582_v58, %v583_v62 }
 0x1c9   :  { %v576_v59 = vmax.f32 %v562_v56, %v575_v0  ;;  %v589_v3 = vrot.slane %v588_v5, 2  ;;  %v572_v6 = vmax.f32 %v570_v60, %v571_v1  ;;  %v585_v10 = vrot.slane %v584_v9, 1 }
 0x1cb   :  { %v577_v61 = vrot.slane %v576_v59, 2  ;;  %v590_v7 = vmax.f32 %v588_v5, %v589_v3  ;;  %v573_v12 = vrot.slane %v572_v6, 1  ;;  %v586_v17 = vmax.f32 %v584_v9, %v585_v10 }
 0x1cd   :  { %v578_v63 = vmax.f32 %v576_v59, %v577_v61  ;;  %v591_v13 = vrot.slane %v590_v7, 1  ;;  %v574_v21 = vmax.f32 %v572_v6, %v573_v12  ;;  %v626_v28 = vadd.f32 %v2195_v11, %v586_v17 }
 0x1cf   :  { %v579_v4 = vrot.slane %v578_v63, 1  ;;  %v592_v26 = vmax.f32 %v590_v7, %v591_v13  ;;  %v624_v35 = vadd.f32 %v2195_v11, %v574_v21  ;;  %vm634_vm5 = vcmp.gt.f32.partialorder %v626_v28, 0.0 }
 0x1d0   :  { %v642_v42 = vmul.f32 0.01, %v626_v28 }
 0x1d1   :  { %v580_v8 = vmax.f32 %v578_v63, %v579_v4  ;;  %v627_v36 = vadd.f32 %v2195_v11, %v592_v26  ;;  %vm632_vm6 = vcmp.gt.f32.partialorder %v624_v35, 0.0  ;;  %v640_v48 = vmul.f32 0.01, %v624_v35 }
 0x1d2   :  { %v650_v54 = vsel %vm634_vm5, %v626_v28, %v642_v42  ;;  %vm1321_vm5 = vcmask 15360  }
 0x1d3   :  { %v625_v14 = vadd.f32 %v2195_v11, %v580_v8  ;;  %v643_v49 = vmul.f32 0.01, %v627_v36  ;;  %vm635_vm7 = vcmp.gt.f32.partialorder %v627_v36, 0.0  ;;  %v648_v0 = vsel %vm632_vm6, %v624_v35, %v640_v48  ;;  %v1616_v48 = vld [vmem:[#allocation14 + $0x44] ss:$8 sps:$4 sm:$0xff]  }
 0x1d4   :  { %v658_v62 = vpack.c.bf16 %v650_v54, %v650_v54  ;;  %v656_v1 = vpack.c.bf16 %v648_v0, %v648_v0  ;;  %v1623_v54 = vld [vmem:[#allocation14 + $0x10] ss:$8 sps:$4 sm:$0xff]   ;;  %v1634_v0 = vld [vmem:[#allocation14 + $0xe4] ss:$8 sps:$4 sm:$0xff]   ;;  %vm1323_vm6 = vcmask 48128  }
 0x1d5   :  { %v641_v22 = vmul.f32 0.01, %v625_v14  ;;  %vm633_vm4 = vcmp.gt.f32.partialorder %v625_v14, 0.0  ;;  %v651_v59 = vsel %vm635_vm7, %v627_v36, %v643_v49  ;;  %v1614_v49 = vld [vmem:[#allocation14 + $0x40] ss:$8 sps:$4 sm:$0xff]   ;;  %vm1325_vm7 = vcmask 310272  }
 0x1d6   :  { %v1490_v15 = vpop.f32.mrf.mxu0  ;;  %v659_v4 = vpack.c.bf16 %v651_v59, %v651_v59  ;;  %v697_v13 = vunpack.c.l.b16 %v658_v62  ;;  %v1637_v59 = vld [vmem:[#allocation14 + $0xd4] ss:$8 sps:$4 sm:$0xff]  }
 0x1d7   :  { %v567_v16 = vadd.f32 %v1490_v15, %v560_v47  ;;  %v649_v37 = vsel %vm633_vm4, %v625_v14, %v641_v22  ;;  %v1643_v62 = vld [vmem:[#allocation14 + $0xb4] ss:$8 sps:$4 sm:$0xff]  }
 0x1d8   :  { %v545_v18 = vpop.f32.mrf.mxu0  ;;  %v657_v50 = vpack.c.bf16 %v649_v37, %v649_v37  ;;  %v698_v21 = vunpack.c.l.b16 %v659_v4 }
 0x1d9   :  { %v605_v19 = vrot.slane %v567_v16, 4  ;;  %v565_v20 = vadd.f32 %v560_v47, %v545_v18 }
 0x1da   :  { %v1491_v23 = vpop.f32.mrf.mxu0  ;;  %v696_v58 = vunpack.c.l.b16 %v657_v50  ;;  %v1619_v50 = vld [vmem:[#allocation14 + $0x34] ss:$8 sps:$4 sm:$0xff]  }
 0x1db   :  { %v606_v24 = vmax.f32 %v567_v16, %v605_v19  ;;  %v593_v25 = vrot.slane %v565_v20, 4  ;;  %v568_v27 = vadd.f32 %v1491_v23, %v560_v47  ;;  %v695_v16 = vunpack.c.l.b16 %v656_v1  ;;  %v1646_v1 = vld [vmem:[#allocation14 + $0xa4] ss:$8 sps:$4 sm:$0xff]  }
 0x1dc   :  { %v548_v30 = vpop.f32.mrf.mxu0  ;;  %v703_v6 = vrot.slane %v696_v58, 7  ;;  %v706_v23 = vrot.slane %v697_v13, 6  ;;  %v1632_v58 = vld [vmem:[#allocation14 + $0xe0] ss:$8 sps:$4 sm:$0xff]   ;;  %v1649_v13 = vld [vmem:[#allocation14 + $0x94] ss:$8 sps:$4 sm:$0xff]  }
 0x1dd   :  { %v607_v32 = vrot.slane %v606_v24, 2  ;;  %v594_v31 = vmax.f32 %v565_v20, %v593_v25  ;;  %v611_v33 = vrot.slane %v568_v27, 4  ;;  %v566_v34 = vadd.f32 %v560_v47, %v548_v30 }
 0x1de   :  { %v705_v22 = vsel %vm704_vm11, %v703_v6, %v695_v16  ;;  %v923_v4 = vpop.f32.mrf.mxu0 }
 0x1df   :  { %v608_v38 = vmax.f32 %v606_v24, %v607_v32  ;;  %v595_v39 = vrot.slane %v594_v31, 2  ;;  %v612_v40 = vmax.f32 %v568_v27, %v611_v33  ;;  %v599_v41 = vrot.slane %v566_v34, 4 }
 0x1e0   :  { %v708_v30 = vsel %vm707_vm13, %v706_v23, %v705_v22  ;;  %v709_v32 = vrot.slane %v698_v21, 5  ;;  %v1530_v6 = vpop.f32.mrf.mxu0  ;;  %v1655_v21 = vld [vmem:[%s2258_s11 + $0x28] sm:$0xff]   ;;  %v1657_v22 = vld [vmem:[%s2258_s11 + $0x18] sm:$0xff]   ;;  %v1658_v23 = vld [vmem:[%s2258_s11 + $0x10] sm:$0xff]  }
 0x1e1   :  { %v609_v43 = vrot.slane %v608_v38, 1  ;;  %v596_v44 = vmax.f32 %v594_v31, %v595_v39  ;;  %v613_v45 = vrot.slane %v612_v40, 2  ;;  %v600_v46 = vmax.f32 %v566_v34, %v599_v41  ;;  %v1605_v41 = vld [vmem:[#allocation14 + $0x70] ss:$8 sps:$4 sm:$0xff]  }
 0x1e2   :  { %v711_v33 = vsel %vm710_vm14, %v709_v32, %v708_v30 }
 0x1e3   :  { %v610_v47 = vmax.f32 %v608_v38, %v609_v43  ;;  %v597_v51 = vrot.slane %v596_v44, 1  ;;  %v614_v52 = vmax.f32 %v612_v40, %v613_v45  ;;  %v601_v53 = vrot.slane %v600_v46, 2  ;;  %v1610_v43 = vld [vmem:[#allocation14 + $0x64] ss:$8 sps:$4 sm:$0xff]   ;;  %v1613_v45 = vld [vmem:[#allocation14 + $0x54] ss:$8 sps:$4 sm:$0xff]  }
 0x1e5   :  { %v630_v55 = vadd.f32 %v2195_v11, %v610_v47  ;;  %v598_v56 = vmax.f32 %v596_v44, %v597_v51  ;;  %v615_v2 = vrot.slane %v614_v52, 1  ;;  %v602_v57 = vmax.f32 %v600_v46, %v601_v53  ;;  %v1608_v44 = vld [vmem:[#allocation14 + $0x60] ss:$8 sps:$4 sm:$0xff]   ;;  %v1611_v46 = vld [vmem:[#allocation14 + $0x50] ss:$8 sps:$4 sm:$0xff]  }
 0x1e6   :  { %v1617_v47 = vld [vmem:[#allocation14 + $0x30] ss:$8 sps:$4 sm:$0xff]   ;;  %v1622_v51 = vld [vmem:[#allocation14 + $0x24] ss:$8 sps:$4 sm:$0xff]   ;;  %v1625_v53 = vld [vmem:[#allocation14 + $0x14] ss:$8 sps:$4 sm:$0xff]  }
 0x1e7   :  { %v646_v60 = vmul.f32 0.01, %v630_v55  ;;  %v628_v5 = vadd.f32 %v2195_v11, %v598_v56  ;;  %v616_v61 = vmax.f32 %v614_v52, %v615_v2  ;;  %vm638_vm8 = vcmp.gt.f32.partialorder %v630_v55, 0.0  ;;  %v1620_v52 = vld [vmem:[#allocation14 + $0x20] ss:$8 sps:$4 sm:$0xff]  }
 0x1e8   :  { %v603_v63 = vrot.slane %v602_v57, 1  ;;  %v1626_v56 = vld [vmem:[#allocation14] ss:$8 sps:$4 sm:$0xff]   ;;  %v1631_v2 = vld [vmem:[#allocation14 + $0xf4] ss:$8 sps:$4 sm:$0xff]  }
 0x1e9   :  { %vm636_vm9 = vcmp.gt.f32.partialorder %v628_v5, 0.0  ;;  %v644_v3 = vmul.f32 0.01, %v628_v5  ;;  %v631_v9 = vadd.f32 %v2195_v11, %v616_v61  ;;  %v654_v12 = vsel %vm638_vm8, %v630_v55, %v646_v60  ;;  %v1628_v55 = vld [vmem:[#allocation14 + $0x4] ss:$8 sps:$4 sm:$0xff]  }
 0x1ea   :  { %v604_v7 = vmax.f32 %v602_v57, %v603_v63  ;;  %v662_v20 = vpack.c.bf16 %v654_v12, %v654_v12  ;;  %v1629_v57 = vld [vmem:[#allocation14 + $0xf0] ss:$8 sps:$4 sm:$0xff]   ;;  %v1638_v61 = vld [vmem:[#allocation14 + $0xc0] ss:$8 sps:$4 sm:$0xff]   ;;  %vm1327_vm8 = vcmask 572416  }
 0x1eb   :  { %v652_v8 = vsel %vm636_vm9, %v628_v5, %v644_v3  ;;  %v647_v10 = vmul.f32 0.01, %v631_v9  ;;  %vm639_vm10 = vcmp.gt.f32.partialorder %v631_v9, 0.0  ;;  %v1635_v60 = vld [vmem:[#allocation14 + $0xd0] ss:$8 sps:$4 sm:$0xff]  }
 0x1ec   :  { %v660_v14 = vpack.c.bf16 %v652_v8, %v652_v8  ;;  %v629_v15 = vadd.f32 %v2195_v11, %v604_v7  ;;  %v701_v28 = vunpack.c.l.b16 %v662_v20  ;;  %v1640_v5 = vld [vmem:[#allocation14 + $0xc4] ss:$8 sps:$4 sm:$0xff]   ;;  %v1641_v63 = vld [vmem:[#allocation14 + $0xb0] ss:$8 sps:$4 sm:$0xff]   ;;  %v1644_v3 = vld [vmem:[#allocation14 + $0xa0] ss:$8 sps:$4 sm:$0xff]   ;;  %v926_v8 = vpop.f32.mrf.mxu0 }
 0x1ed   :  { %v655_v17 = vsel %vm639_vm10, %v631_v9, %v647_v10  ;;  %v1379_v9 = vld [vmem:[#allocation13] ss:$0 sm:$0xff] }
 0x1ee   :  { %v699_v18 = vunpack.c.l.b16 %v660_v14  ;;  %vm637_vm12 = vcmp.gt.f32.partialorder %v629_v15, 0.0  ;;  %v645_v19 = vmul.f32 0.01, %v629_v15  ;;  %v663_v26 = vpack.c.bf16 %v655_v17, %v655_v17  ;;  %v1531_v10 = vpop.f32.mrf.mxu0  ;;  %v1647_v14 = vld [vmem:[#allocation14 + $0x90] ss:$8 sps:$4 sm:$0xff]   ;;  %v1654_v20 = vld [vmem:[%s2258_s11 + $0x30] sm:$0xff]  }
 0x1ef   :  { %v718_v36 = vrot.slane %v701_v28, 2  ;;  %v924_v7 = vadd.f32 %v1379_v9, %v923_v4  ;;  %v1650_v17 = vld [vmem:[#allocation14 + $0x80] ss:$8 sps:$4 sm:$0xff]  }
 0x1f0   :  { %v653_v24 = vsel %vm637_vm12, %v629_v15, %v645_v19  ;;  %v712_v27 = vrot.slane %v699_v18, 4  ;;  %v702_v31 = vunpack.c.l.b16 %v663_v26  ;;  %v1652_v15 = vld [vmem:[#allocation14 + $0x84] ss:$8 sps:$4 sm:$0xff]  }
 0x1f1   :  { %v661_v25 = vpack.c.bf16 %v653_v24, %v653_v24  ;;  %v930_v12 = vmul.f32 0.01, %v924_v7  ;;  %vm929_vm3 = vcmp.gt.f32.partialorder %v924_v7, 0.0  ;;  %v1653_v19 = vld [vmem:[%s2258_s11 + $0x38] sm:$0xff]   ;;  %v1656_v26 = vld [vmem:[%s2258_s11 + $0x20] sm:$0xff]  }
 0x1f2   :  { %v714_v35 = vsel %vm713_vm15, %v712_v27, %v711_v33  ;;  %v721_v38 = vrot.slane %v702_v31, 1  ;;  %1533 = vmatpush3.bf16.msra.mxu0 %v1653_v19  ;;  %v1370_v24 = vld [vmem:[#allocation10] ss:$0 sm:$0xff] }
 0x1f3   :  { %v700_v11 = vunpack.c.l.b16 %v661_v25  ;;  %v2205_v16 = vsel %vm929_vm3, %v924_v7, %v930_v12  ;;  %1534 = vmatprep.subr.bf16.mxu0 %v1896_v29 }
 0x1f4   :  { %v933_v18 = vpack.c.bf16 %v2205_v16, %v2205_v16 }
 0x1f5   :  { %v715_v34 = vrot.slane %v700_v11, 3 }
 0x1f6   :  { %1535 = vmatpush3.bf16.msra.mxu0 %v1654_v20 }
 0x1f7   :  { %v717_v37 = vsel %vm716_vm0, %v715_v34, %v714_v35  ;;  %1536 = vmatprep.subr.bf16.mxu0 %v1896_v29  ;;  %v1659_v34 = vld [vmem:[%s2258_s11 + $0x8] sm:$0xff]   ;;  %v1660_v35 = vld [vmem:[%s2258_s11] sm:$0xff]   ;;  %s1898_s11 = smov 6  }
 0x1f8   :  { %v720_v39 = vsel %vm719_vm1, %v718_v36, %v717_v37  ;;  %v968_v36 = vlaneseq }
 0x1f9   :  { %v723_v40 = vsel %vm722_vm2, %v721_v38, %v720_v39  ;;  %v966_v39 = vld [vmem:[#allocation16] sm:$0x3] }
 0x1fa   :  { %v724_v42 = vpack.c.b16 %v723_v40, %v723_v40  ;;  %1537 = vmatpush3.bf16.msra.mxu0 %v1655_v21  ;;  %v969_v37 = vshrl.u32 %v968_v36, 7 }
 0x1fb   :  { %1538 = vmatprep.subr.bf16.mxu0 %v1896_v29 }
 0x1fc   :  { %1509 = vmatmul.mubr.bf16.vlgmr.msra.gmra.mxu1 %v724_v42  ;;  %v970_v38 = vsub.s32 0, %v969_v37  ;;  %v974_v40 = vsub.s32 1, %v969_v37 }
 0x1fd   :  { %1139 = vmatpush1.bf16.msra.mxu1 %v1605_v41  ;;  %1170 = vmatprep.mubr.bf16.mxu1 %v933_v18 }
 0x1fe   :  { %1140 = vmatprep.subr.bf16.mxu1 %v1610_v43  ;;  %1539 = vmatpush3.bf16.msra.mxu0 %v1656_v26  ;;  %v971_v41 = vrot.slane %v966_v39, %v970_v38  ;;  %v975_v42 = vrot.slane %v966_v39, %v974_v40 }
 0x1ff   :  { %1540 = vmatprep.subr.bf16.mxu0 %v1896_v29 }
 0x201   :  { %1141 = vmatpush1.bf16.msra.mxu1 %v1608_v44 }
 0x202   :  { %1142 = vmatprep.subr.bf16.mxu1 %v1613_v45  ;;  %1541 = vmatpush3.bf16.msra.mxu0 %v1657_v22 }
 0x203   :  { %1542 = vmatprep.subr.bf16.mxu0 %v1896_v29 }
 0x205   :  { %1143 = vmatpush1.bf16.msra.mxu1 %v1611_v46 }
 0x206   :  { %1144 = vmatprep.subr.bf16.mxu1 %v1616_v48  ;;  %1543 = vmatpush3.bf16.msra.mxu0 %v1658_v23 }
 0x207   :  { %1544 = vmatprep.subr.bf16.mxu0 %v1896_v29 }
 0x209   :  { %1145 = vmatpush1.bf16.msra.mxu1 %v1614_v49 }
 0x20a   :  { %1146 = vmatprep.subr.bf16.mxu1 %v1619_v50  ;;  %1545 = vmatpush3.bf16.msra.mxu0 %v1659_v34  ;;  %v1420_v50 = vld [vmem:[%s2259_s12] ss:$0 sm:$0xff]  ;;  %s1899_s12 = smov 2  }
 0x20b   :  { %1546 = vmatprep.subr.bf16.mxu0 %v1896_v29 }
 0x20d   :  { %1147 = vmatpush1.bf16.msra.mxu1 %v1617_v47 }
 0x20e   :  { %1148 = vmatprep.subr.bf16.mxu1 %v1622_v51  ;;  %1547 = vmatpush3.bf16.msra.mxu0 %v1660_v35 }
 0x211   :  { %1149 = vmatpush1.bf16.msra.mxu1 %v1620_v52 }
 0x212   :  { %1150 = vmatprep.subr.bf16.mxu1 %v1625_v53 }
 0x215   :  { %1151 = vmatpush1.bf16.msra.mxu1 %v1623_v54 }
 0x216   :  { %1152 = vmatprep.subr.bf16.mxu1 %v1628_v55 }
 0x219   :  { %1153 = vmatpush1.bf16.msra.mxu1 %v1626_v56 }
 0x21a   :  { %1154 = vmatprep.subr.bf16.mxu1 %v1631_v2 }
 0x21d   :  { %1155 = vmatpush2.bf16.msra.mxu1 %v1629_v57 }
 0x21e   :  { %1156 = vmatprep.subr.bf16.mxu1 %v1634_v0 }
 0x221   :  { %1157 = vmatpush2.bf16.msra.mxu1 %v1632_v58 }
 0x222   :  { %1158 = vmatprep.subr.bf16.mxu1 %v1637_v59 }
 0x225   :  { %1159 = vmatpush2.bf16.msra.mxu1 %v1635_v60 }
 0x226   :  { %1160 = vmatprep.subr.bf16.mxu1 %v1640_v5 }
 0x229   :  { %1161 = vmatpush2.bf16.msra.mxu1 %v1638_v61 }
 0x22a   :  { %1162 = vmatprep.subr.bf16.mxu1 %v1643_v62 }
 0x22d   :  { %1163 = vmatpush2.bf16.msra.mxu1 %v1641_v63 }
 0x22e   :  { %1164 = vmatprep.subr.bf16.mxu1 %v1646_v1 }
 0x231   :  { %1165 = vmatpush2.bf16.msra.mxu1 %v1644_v3 }
 0x232   :  { %1166 = vmatprep.subr.bf16.mxu1 %v1649_v13 }
 0x235   :  { %1167 = vmatpush2.bf16.msra.mxu1 %v1647_v14 }
 0x236   :  { %1168 = vmatprep.subr.bf16.mxu1 %v1652_v15 }
 0x239   :  { %1169 = vmatpush2.bf16.msra.mxu1 %v1650_v17 }
 0x2bc   :  { %v808_v25 = vpop.f32.mrf.mxu1 }
 0x2bd   :  { %v809_v27 = vadd.f32 %v1370_v24, %v808_v25 }
 0x2be   :  { %v1510_v28 = vpop.f32.mrf.mxu1 }
 0x2bf   :  { %vm814_vm4 = vcmp.gt.f32.partialorder %v809_v27, 0.0  ;;  %v815_v30 = vmul.f32 0.01, %v809_v27 }
 0x2c0   :  { %v811_v32 = vpop.f32.mrf.mxu1 }
 0x2c1   :  { %v816_v11 = vsel %vm814_vm4, %v809_v27, %v815_v30 }
 0x2c2   :  { %v932_v31 = vpack.c.bf16 %v816_v11, %v816_v11  ;;  %v1511_v33 = vpop.f32.mrf.mxu1 }
 0x2c4   :  { %1171 = vmatmul.mubr.bf16.vlgmr.msra.gmra.mxu1 %v932_v31 }
 0x384   :  { %v1172_v43 = vpop.f32.mrf.mxu1 }
 0x385   :  { %v1173_v44 = vadd.f32 %v1172_v43, %v971_v41 }
 0x386   :  { %v1174_v45 = vpop.f32.mrf.mxu1 }
 0x387   :  { %v1175_v46 = vadd.f32 %v1174_v45, %v975_v42  ;;  %1179 = vmax.xlane.f32.xlu1 %v1173_v44 }
 0x388   :  { %v1176_v48 = vpop.f32.mrf.mxu1 }
 0x389   :  { %v1188_v49 = vpack.c.bf16 %v1175_v46, %v1175_v46 }
 0x38a   :  { %v1177_v29 = vpop.f32.mrf.mxu1 }
 0x38b   :  { %1549 = vmatmul.mubr.bf16.vlgmr.msra.gmra.mxu0 %v1188_v49 }
 0x410   :  { %v1180_v55 = vpop.xlane.xlu1 %1179 }
 0x411   :  { %v1181_v2 = vsub.f32 %v1173_v44, %v1180_v55 }
 0x413   :  { %v1182_v58 = vmul.f32 1.442695, %v1181_v2 }
 0x44b   :  { %v1294_v47 = vpop.f32.mrf.mxu0 }
 0x44c   :  { %v1295_v51 = vadd.f32 %v1420_v50, %v1294_v47 }
 0x44d   :  { %v1550_v52 = vpop.f32.mrf.mxu0 }
 0x44e   :  { %1300 = vmax.xlane.f32.xlu0 %v1295_v51 }
 0x44f   :  { %v1297_v53 = vpop.f32.mrf.mxu0 }
 0x451   :  { %v1551_v54 = vpop.f32.mrf.mxu0 }
 0x4d7   :  { %v1301_v56 = vpop.xlane.xlu0 %1300 }
 0x4d8   :  { %v1302_v57 = vsub.f32 %v1295_v51, %v1301_v56 }
 0x4da   :  { %v1303_v0 = vmul.f32 1.442695, %v1302_v57 }
 0x4dc   :  { %1661 = vpow2.f32 %v1303_v0 }
 0x4dd   :  { %1663 = vpow2.f32 %v1182_v58 }
 0x4e9   :  { %v1662_v59 = vpop.eup %1661 }
 0x4ea   :  { %1305 = vadd.xlane.f32.xlu0 %v1662_v59  ;;  %v1664_v60 = vpop.eup %1663 }
 0x4ee   :  { %1184 = vadd.xlane.f32.xlu0 %v1664_v60 }
 0x504   :  { %1314 = vrot.lane.b32.xlu0 %v816_v11, %s1898_s11 }
 0x573   :  { %v1306_v5 = vpop.xlane.xlu0 %1305 }
 0x574   :  { %1665 = vrcp.f32 %v1306_v5 }
 0x577   :  { %v1185_v63 = vpop.xlane.xlu0 %1184 }
 0x578   :  { %1667 = vrcp.f32 %v1185_v63 }
 0x57b   :  { %v1315_v6 = vpop.permute.xlu0 %1314 }
 0x581   :  { %v1666_v61 = vpop.eup %1665 }
 0x582   :  { %v1308_v62 = vmul.f32 %v1666_v61, %v1662_v59 }
 0x584   :  { %1310 = vrot.lane.b32.xlu1 %v1308_v62, %s1899_s12 }
 0x585   :  { %v1668_v1 = vpop.eup %1667 }
 0x586   :  { %v1187_v3 = vmul.f32 %v1668_v1, %v1664_v60 }
 0x588   :  { %1318 = vrot.lane.b32.xlu1 %v2205_v16, %s1900_s26 }
 0x5f6   :  { %v1311_v9 = vpop.permute.xlu1 %1310 }
 0x5f7   :  { %v1322_v4 = vsel %vm1321_vm5, %v1187_v3, %v1311_v9 }
 0x5f8   :  { %v1324_v7 = vsel %vm1323_vm6, %v1322_v4, %v1315_v6 }
 0x5fa   :  { %v1319_v8 = vpop.permute.xlu1 %1318 }
 0x5fb   :  { %v1326_v10 = vsel %vm1325_vm7, %v1324_v7, %v1319_v8 }
 0x5fc   :  { %v1328_v12 = vsel %vm1327_vm8, %v1326_v10, 0.0 }
 0x5fd   :  { %1329 = vst [vmem:[#allocation17] sm:$0xff] %v1328_v12 }
 0x5fe   :  { %1860 = shalt.err (!%p1857_p7)
}
 0x5ff   :  { %1339 = dma.vmem_to_hbm [thread:$0]  %s1337_s28, 128, %s2260_s13, [#allocation4]  }
 0x600   :  { %1879 = dma.done.wait [#allocation4], 128  }
 0x601   :  { %1880 = vsyncadd [#allocation4], 4294967168 }
 0x602   :  { %1343 = vsyncpa [#allocation3], 1 }
 0x603   :  { %1344 = vsyncpa [#allocation6], 1 }
 0x604   :  { %1345 = vsyncpa [#allocation9], 1 }
 0x605   :  { %1346 = vsyncpa [#allocation12], 1 }
 0x606   :  { %1347 = vsyncpa [#allocation15], 1 }
 0x607   :  { %1348 = vsyncpa [#allocation4], 1 }

</bundles_post_ra>
